<compile_context>
chip_gen: v6e
topology: v6e:2x2x1
jax: 0.10.0
libtpu: 0.0.40
codegen_flags: <defaults>
</compile_context>

<pallas_src>
import math
from functools import partial

import jax
import jax.numpy as jnp
from jax.experimental import pallas as pl
from jax.experimental.pallas import tpu as pltpu


# --------------------------------------------------------------------------
# Glue: patching ('b c (h ph) (w pw) -> b (h w) (ph pw c)') — pure data move
# --------------------------------------------------------------------------
def patching(x, ps):
    B, C, H, W = x.shape
    h, w = H // ps, W // ps
    x = x.reshape(B, C, h, ps, w, ps)
    x = x.transpose(0, 2, 4, 3, 5, 1)          # b h w ph pw c
    return x.reshape(B, h * w, ps * ps * C)


def pad_patches(xp, seq_pad):
    """(B, N, P) -> (B, Sp, P): zero row 0 (cls slot) + zero tail padding."""
    B, N, P = xp.shape
    lead = jnp.zeros((B, 1, P), xp.dtype)
    tail = jnp.zeros((B, seq_pad - 1 - N, P), xp.dtype)
    return jnp.concatenate([lead, xp, tail], axis=1)


def _round_up(n, m):
    return ((n + m - 1) // m) * m


def _batch_block_cap():
    # Generation-aware: smaller activation blocks on 64 MiB-VMEM parts (v7x),
    # larger on 128 MiB parts (v5e/v6e).
    try:
        cap = getattr(pltpu.get_tpu_info(), "vmem_capacity_bytes", None)
        if cap and cap <= 96 * 2 ** 20:
            return 4
    except Exception:
        pass
    return 16


def _pick_block(b, cap):
    """Largest divisor of b with >=2 batch blocks (megacore) and <=cap."""
    if b <= 1:
        return 1
    limit = max(1, min(cap, b // 2))
    for cand in range(limit, 0, -1):
        if b % cand == 0:
            return cand
    return 1


def _compiler_params(dimension_semantics):
    kwargs = dict(dimension_semantics=dimension_semantics)
    try:
        cap = getattr(pltpu.get_tpu_info(), "vmem_capacity_bytes", None)
        if cap:
            kwargs["vmem_limit_bytes"] = int(
                max(32 * 2 ** 20, min(0.7 * cap, 112 * 2 ** 20)))
    except Exception:
        pass
    return pltpu.CompilerParams(**kwargs)


def _erf(x):
    # Abramowitz & Stegun 7.1.26 (|err| <= 1.5e-7): exact-GELU erf built only
    # from ops with guaranteed Mosaic lowerings (exp runs on the EUP slot).
    a1, a2, a3, a4, a5 = (0.254829592, -0.284496736, 1.421413741,
                          -1.453152027, 1.061405429)
    pc = 0.3275911
    ax = jnp.abs(x)
    t = 1.0 / (1.0 + pc * ax)
    poly = ((((a5 * t + a4) * t + a3) * t + a2) * t + a1) * t
    y = 1.0 - poly * jnp.exp(-ax * ax)
    return jnp.where(x < 0, -y, y)


# --------------------------------------------------------------------------
# Glue: prepare kernel-ready parameters (fused scaled QKV, embed-add tensor,
# lane-padded classifier, bf16 weights). One-time work outside the hot path.
# --------------------------------------------------------------------------
def prepare_params(params, *, n_heads, seq_pad, lane=128):
    enc = params["enc"]
    D = enc["wq"].shape[0]
    hd = D // n_heads
    bf = jnp.bfloat16
    scale = 1.0 / math.sqrt(hd)

    # Fused QKV with the 1/sqrt(head_dim) attention scale folded into Q.
    w_qkv = jnp.concatenate([enc["wq"] * scale, enc["wk"], enc["wv"]],
                            axis=1).astype(bf)
    b_qkv = jnp.concatenate([enc["bq"] * scale, enc["bk"], enc["bv"]],
                            axis=1).astype(jnp.float32)

    # Lane-padded classifier (output sliced back to n_classes outside).
    ncls = params["head_w"].shape[1]
    ncp = _round_up(ncls, lane)
    head_w_pad = jnp.pad(params["head_w"], ((0, 0), (0, ncp - ncls))).astype(bf)
    head_b_pad = jnp.pad(params["head_b"], ((0, 0), (0, ncp - ncls)))

    # Additive embedding slab over the padded sequence:
    #   row 0            : cls + pos[0]        (cls slot; its x row is zero)
    #   rows 1..N        : pos[i] + proj_bias  (projection bias folded in)
    #   rows N+1..Sp-1   : 0                   (padding)
    pos = params["pos"][0]                                       # (S, D)
    S = pos.shape[0]
    embed_add = jnp.concatenate([
        params["cls"][0, 0:1, :] + pos[0:1, :],
        pos[1:, :] + params["proj_b"],
        jnp.zeros((seq_pad - S, D), jnp.float32)], axis=0)[None]  # (1, Sp, D)

    return dict(
        proj_w=params["proj_w"].astype(bf),
        embed_add=embed_add,
        ln_g=enc["ln_g"], ln_b=enc["ln_b"],
        w_qkv=w_qkv, b_qkv=b_qkv,
        w1=enc["w1"].astype(bf), b1=enc["b1"],
        w2=enc["w2"].astype(bf), b2=enc["b2"],
        head_ln_g=params["head_ln_g"], head_ln_b=params["head_ln_b"],
        head_w_pad=head_w_pad, head_b_pad=head_b_pad,
    )


# --------------------------------------------------------------------------
# Kernel 1: patch projection + cls token + positional embedding
#   out = (x_pad @ W_proj) + embed_add  — one matmul, one aligned slab store.
# --------------------------------------------------------------------------
def _embed_kernel(x_ref, w_ref, add_ref, o_ref):
    bt, Sp, P = x_ref.shape
    D = w_ref.shape[1]
    xb = x_ref[...].astype(jnp.bfloat16).reshape(bt * Sp, P)
    proj = jnp.dot(xb, w_ref[...], preferred_element_type=jnp.float32)
    o_ref[...] = (proj.reshape(bt, Sp, D) + add_ref[...]).astype(o_ref.dtype)


def embed_proj(x_pad, kp):
    B, Sp, P = x_pad.shape
    D = kp["proj_w"].shape[1]
    bt = _pick_block(B, _batch_block_cap())
    return pl.pallas_call(
        _embed_kernel,
        out_shape=jax.ShapeDtypeStruct((B, Sp, D), jnp.float32),
        grid=(B // bt,),
        in_specs=[pl.BlockSpec((bt, Sp, P), lambda i: (i, 0, 0)),
                  pl.BlockSpec((P, D), lambda i: (0, 0)),
                  pl.BlockSpec((1, Sp, D), lambda i: (0, 0, 0))],
        out_specs=pl.BlockSpec((bt, Sp, D), lambda i: (i, 0, 0)),
        compiler_params=_compiler_params(("parallel",)),
    )(x_pad, kp["proj_w"], kp["embed_add"])


# --------------------------------------------------------------------------
# Kernel 2: full transformer encoder (all depth layers; shared weights) with
# the MLP head fused into the last-depth epilogue.  Grid = (batch, depth);
# the f32 residual stream lives in a VMEM scratch across depth steps and only
# (bt, 1, NCp) logits are written back to HBM.
# --------------------------------------------------------------------------
def _encoder_kernel(x_ref, g_ref, be_ref, wqkv_ref, bqkv_ref,
                    w1_ref, b1_ref, w2_ref, b2_ref,
                    hg_ref, hbe_ref, hw_ref, hb_ref,
                    o_ref, st_ref, *, n_heads, head_dim, seq_valid):
    bt, Sp, D = x_ref.shape
    M = bt * Sp
    hd = head_dim
    d_idx = pl.program_id(1)

    @pl.when(d_idx == 0)
    def _():
        st_ref[...] = x_ref[...].reshape(M, D)

    x2 = st_ref[...]                                             # (M, D) f32
    g = g_ref[...]
    be = be_ref[...]

    def ln(h, gg, bb):
        mu = jnp.mean(h, axis=-1, keepdims=True)
        var = jnp.mean(jnp.square(h - mu), axis=-1, keepdims=True)
        return (h - mu) * jax.lax.rsqrt(var + 1e-5) * gg + bb

    # ------------- multi-head self-attention (fused QKV, no out-proj) ------
    h_bf = ln(x2, g, be).astype(jnp.bfloat16)
    qkv = (jnp.dot(h_bf, wqkv_ref[...], preferred_element_type=jnp.float32)
           + bqkv_ref[...])                                      # (M, 3D); q pre-scaled
    q3 = qkv[:, 0 * D:1 * D].astype(jnp.bfloat16).reshape(bt, Sp, D)
    k3 = qkv[:, 1 * D:2 * D].astype(jnp.bfloat16).reshape(bt, Sp, D)
    v3 = qkv[:, 2 * D:3 * D].astype(jnp.bfloat16).reshape(bt, Sp, D)

    # Additive mask for padded key positions (hoisted out of the head loop).
    key_bias = jnp.where(
        jax.lax.broadcasted_iota(jnp.int32, (1, 1, Sp), 2) < seq_valid,
        0.0, -1e30).astype(jnp.float32)

    outs = []
    for h in range(n_heads):                                     # small static loop
        lo = h * hd
        s = jnp.einsum('bqd,bkd->bqk', q3[:, :, lo:lo + hd], k3[:, :, lo:lo + hd],
                       preferred_element_type=jnp.float32)       # (bt, Sp, Sp)
        s = s + key_bias
        s = s - jnp.max(s, axis=-1, keepdims=True)
        p = jnp.exp(s)
        p = p * pl.reciprocal(jnp.sum(p, axis=-1, keepdims=True), approx=True)
        outs.append(jnp.einsum('bqk,bkd->bqd', p.astype(jnp.bfloat16),
                               v3[:, :, lo:lo + hd],
                               preferred_element_type=jnp.float32))
    merged = jnp.concatenate(outs, axis=-1).reshape(M, D)        # (M, D) f32
    x2 = x2 + merged                                             # residual

    # ------------- MLP block: Linear -> exact GELU -> Linear ---------------
    h2 = ln(x2, g, be).astype(jnp.bfloat16)
    m = jnp.dot(h2, w1_ref[...], preferred_element_type=jnp.float32) + b1_ref[...]
    m = 0.5 * m * (1.0 + _erf(m * (1.0 / math.sqrt(2.0))))       # exact GELU
    m = jnp.dot(m.astype(jnp.bfloat16), w2_ref[...],
                preferred_element_type=jnp.float32) + b2_ref[...]
    x2 = x2 + m                                                  # residual
    # TODO(synk): nn.Dropout(0.1) layers are treated as identity (eval mode).

    st_ref[...] = x2

    # ------------- last-depth epilogue: CLS row -> LN -> classifier --------
    @pl.when(d_idx == pl.num_programs(1) - 1)
    def _():
        cls = x2.reshape(bt, Sp, D)[:, 0, :]                     # (bt, D)
        hc = ln(cls, hg_ref[...], hbe_ref[...]).astype(jnp.bfloat16)
        logits = (jnp.dot(hc, hw_ref[...], preferred_element_type=jnp.float32)
                  + hb_ref[...])                                 # (bt, NCp)
        o_ref[:, 0, :] = logits.astype(o_ref.dtype)


def encoder_head(x, kp, *, depth, n_heads, seq_valid):
    B, Sp, D = x.shape
    hd = D // n_heads
    Hm = kp["w1"].shape[1]
    NCp = kp["head_w_pad"].shape[1]
    bt = _pick_block(B, _batch_block_cap())

    def const(shape):
        zeros = (0,) * len(shape)
        return pl.BlockSpec(shape, lambda b, d, z=zeros: z)

    kern = partial(_encoder_kernel, n_heads=n_heads, head_dim=hd,
                   seq_valid=seq_valid)
    # TODO(synk): on v7x, single-buffering the constant-index weight specs
    # (pipeline_mode=pl.Buffered(1)) would further cut resident VMEM.
    return pl.pallas_call(
        kern,
        out_shape=jax.ShapeDtypeStruct((B, 1, NCp), jnp.float32),
        grid=(B // bt, depth),
        in_specs=[pl.BlockSpec((bt, Sp, D), lambda b, d: (b, 0, 0)),
                  const((1, D)), const((1, D)),
                  const((D, 3 * D)), const((1, 3 * D)),
                  const((D, Hm)), const((1, Hm)),
                  const((Hm, D)), const((1, D)),
                  const((1, D)), const((1, D)),
                  const((D, NCp)), const((1, NCp))],
        out_specs=pl.BlockSpec((bt, 1, NCp), lambda b, d: (b, 0, 0)),
        scratch_shapes=[pltpu.VMEM((bt * Sp, D), jnp.float32)],
        compiler_params=_compiler_params(("parallel", "arbitrary")),
    )(x, kp["ln_g"], kp["ln_b"], kp["w_qkv"], kp["b_qkv"],
      kp["w1"], kp["b1"], kp["w2"], kp["b2"],
      kp["head_ln_g"], kp["head_ln_b"], kp["head_w_pad"], kp["head_b_pad"])


# --------------------------------------------------------------------------
# Full ViT forward (Pallas-backed)
# --------------------------------------------------------------------------
def vit_forward(img, kp, *, patch_size, depth, n_heads, n_classes, seq_pad):
    xp = patching(img, patch_size)                    # 1. Patching (glue)
    x_pad = pad_patches(xp, seq_pad)                  #    cls slot + seq padding (glue)
    x = embed_proj(x_pad, kp)                         # 2+3. Projection + cls + pos
    seq_valid = xp.shape[1] + 1
    logits = encoder_head(x, kp, depth=depth, n_heads=n_heads,
                          seq_valid=seq_valid)        # 4+5. Encoder + fused MLP head
    return logits[:, 0, :n_classes]


# --------------------------------------------------------------------------
# Pure-JAX reference (same math); bf16_matmuls=True mirrors the kernel casts
# --------------------------------------------------------------------------
def vit_reference(img, params, *, patch_size, depth, n_heads, bf16_matmuls=False):
    cast = (lambda a: a.astype(jnp.bfloat16)) if bf16_matmuls else (lambda a: a)

    def mm(a, b):
        return jnp.dot(cast(a), cast(b), preferred_element_type=jnp.float32)

    def bmm(eq, a, b):
        return jnp.einsum(eq, cast(a), cast(b), preferred_element_type=jnp.float32)

    def ln(h, g, b):
        mu = jnp.mean(h, axis=-1, keepdims=True)
        var = jnp.mean(jnp.square(h - mu), axis=-1, keepdims=True)
        return (h - mu) * jax.lax.rsqrt(var + 1e-5) * g + b

    x = patching(img, patch_size)
    x = mm(x, params["proj_w"]) + params["proj_b"]
    B = x.shape[0]
    cls = jnp.broadcast_to(params["cls"], (B, 1, params["cls"].shape[-1]))
    x = jnp.concatenate([cls, x], axis=1) + params["pos"]

    p = params["enc"]
    _, S, D = x.shape
    hd = D // n_heads
    for _ in range(depth):
        h = ln(x, p["ln_g"], p["ln_b"])
        q = mm(h, p["wq"]) + p["bq"]
        k = mm(h, p["wk"]) + p["bk"]
        v = mm(h, p["wv"]) + p["bv"]
        qh = q.reshape(B, S, n_heads, hd).transpose(0, 2, 1, 3)
        kh = k.reshape(B, S, n_heads, hd).transpose(0, 2, 1, 3)
        vh = v.reshape(B, S, n_heads, hd).transpose(0, 2, 1, 3)
        s = bmm("bhqd,bhkd->bhqk", qh, kh) / math.sqrt(hd)
        a = jax.nn.softmax(s, axis=-1)
        o = bmm("bhqk,bhkd->bhqd", a, vh)
        x = o.transpose(0, 2, 1, 3).reshape(B, S, D) + x
        h2 = ln(x, p["ln_g"], p["ln_b"])
        m = mm(h2, p["w1"]) + p["b1"]
        m = 0.5 * m * (1.0 + jax.lax.erf(m / math.sqrt(2.0)))
        m = mm(m, p["w2"]) + p["b2"]
        x = m + x
    x = x[:, 0]
    h = ln(x, params["head_ln_g"], params["head_ln_b"])
    return mm(h, params["head_w"]) + params["head_b"]


# --------------------------------------------------------------------------
if __name__ == "__main__":
    # Small config: img 16x16, 4 channels, patch 4 -> 16 patches, seq = 17
    B, C, IMG, PS = 2, 4, 16, 4
    DIM, DEPTH, HEADS, MLP_DIM, NCLS = 32, 2, 4, 64, 10
    N_PATCHES = (IMG // PS) ** 2
    PATCH_DIM = C * PS * PS
    SEQ = N_PATCHES + 1
    SEQ_PAD = _round_up(SEQ, 8)

    key = jax.random.PRNGKey(0)
    ks = jax.random.split(key, 16)

    def w_init(k, shape, scale=0.1):
        return scale * jax.random.normal(k, shape, jnp.float32)

    params = {
        "proj_w": w_init(ks[0], (PATCH_DIM, DIM)),
        "proj_b": w_init(ks[1], (1, DIM)),
        "cls": jax.random.normal(ks[2], (1, 1, DIM), jnp.float32),
        "pos": jax.random.normal(ks[3], (1, SEQ, DIM), jnp.float32),
        "enc": {
            "ln_g": jnp.ones((1, DIM), jnp.float32),
            "ln_b": jnp.zeros((1, DIM), jnp.float32),
            "wq": w_init(ks[4], (DIM, DIM)), "bq": w_init(ks[5], (1, DIM)),
            "wk": w_init(ks[6], (DIM, DIM)), "bk": w_init(ks[7], (1, DIM)),
            "wv": w_init(ks[8], (DIM, DIM)), "bv": w_init(ks[9], (1, DIM)),
            "w1": w_init(ks[10], (DIM, MLP_DIM)), "b1": w_init(ks[11], (1, MLP_DIM)),
            "w2": w_init(ks[12], (MLP_DIM, DIM)), "b2": w_init(ks[13], (1, DIM)),
        },
        "head_ln_g": jnp.ones((1, DIM), jnp.float32),
        "head_ln_b": jnp.zeros((1, DIM), jnp.float32),
        "head_w": w_init(ks[14], (DIM, NCLS)),
        "head_b": jnp.zeros((1, NCLS), jnp.float32),
    }

    img = jax.random.normal(ks[15], (B, C, IMG, IMG), jnp.float32)

    kp = prepare_params(params, n_heads=HEADS, seq_pad=SEQ_PAD)
    fwd = jax.jit(partial(vit_forward, patch_size=PS, depth=DEPTH,
                          n_heads=HEADS, n_classes=NCLS, seq_pad=SEQ_PAD))
    out = jax.block_until_ready(fwd(img, kp))

    ref16 = vit_reference(img, params, patch_size=PS, depth=DEPTH,
                          n_heads=HEADS, bf16_matmuls=True)
    ref32 = vit_reference(img, params, patch_size=PS, depth=DEPTH,
                          n_heads=HEADS, bf16_matmuls=False)

    assert out.shape == (B, NCLS), out.shape
    assert bool(jnp.all(jnp.isfinite(out)))
    assert bool(jnp.allclose(out, ref16, atol=3e-2, rtol=3e-2)), (
        float(jnp.max(jnp.abs(out - ref16))))
    assert bool(jnp.allclose(out, ref32, atol=1.5e-1, rtol=1e-1)), (
        float(jnp.max(jnp.abs(out - ref32))))

    print("KERNEL_OK")
</pallas_src>

<mosaic_0001>
module attributes {stable_mosaic.version = 11 : i64} {
  func.func @_embed_kernel(%arg0: i32, %arg1: memref<1x24x64xf32, #tpu.memory_space<vmem>>, %arg2: memref<64x32xbf16, #tpu.memory_space<vmem>>, %arg3: memref<1x24x32xf32, #tpu.memory_space<vmem>>, %arg4: memref<1x24x32xf32, #tpu.memory_space<vmem>>) attributes {dimension_semantics = [#tpu.dimension_semantics<parallel>], iteration_bounds = array<i64: 2>, scalar_prefetch = 0 : i64, scratch_operands = 0 : i64, tpu.core_type = #tpu.core_type<tc>, window_params = [{transform_indices = @transform_0, window_bounds = array<i64: 1, 24, 64>}, {pipeline_mode = #tpu.pipeline_mode<synchronous>, transform_indices = @transform_1, window_bounds = array<i64: 64, 32>}, {pipeline_mode = #tpu.pipeline_mode<synchronous>, transform_indices = @transform_2, window_bounds = array<i64: 1, 24, 32>}, {transform_indices = @transform_3, window_bounds = array<i64: 1, 24, 32>}]} {
    %c0 = arith.constant 0 : index
    %c0_0 = arith.constant 0 : index
    %c0_1 = arith.constant 0 : index
    %0 = vector.load %arg1[%c0, %c0_0, %c0_1] : memref<1x24x64xf32, #tpu.memory_space<vmem>>, vector<1x24x64xf32>
    %1 = arith.truncf %0 : vector<1x24x64xf32> to vector<1x24x64xbf16>
    %2 = vector.shape_cast %1 : vector<1x24x64xbf16> to vector<24x64xbf16>
    %c0_2 = arith.constant 0 : index
    %c0_3 = arith.constant 0 : index
    %3 = vector.load %arg2[%c0_2, %c0_3] : memref<64x32xbf16, #tpu.memory_space<vmem>>, vector<64x32xbf16>
    %cst = arith.constant dense<0.000000e+00> : vector<24x32xf32>
    %4 = tpu.matmul %2, %3, %cst {dimension_numbers = #tpu.dot_dimension_numbers<[1], [0], [0], [1], [0, 0, 1, 1], [], []>} : vector<24x64xbf16>, vector<64x32xbf16>, vector<24x32xf32> -> vector<24x32xf32>
    %5 = vector.shape_cast %4 : vector<24x32xf32> to vector<1x24x32xf32>
    %c0_4 = arith.constant 0 : index
    %c0_5 = arith.constant 0 : index
    %c0_6 = arith.constant 0 : index
    %6 = vector.load %arg3[%c0_4, %c0_5, %c0_6] : memref<1x24x32xf32, #tpu.memory_space<vmem>>, vector<1x24x32xf32>
    %7 = arith.addf %5, %6 : vector<1x24x32xf32>
    %c0_7 = arith.constant 0 : index
    %c0_8 = arith.constant 0 : index
    %c0_9 = arith.constant 0 : index
    %8 = vector.load %arg4[%c0_7, %c0_8, %c0_9] : memref<1x24x32xf32, #tpu.memory_space<vmem>>, vector<1x24x32xf32>
    tpu.vector_store %arg4[%c0_7, %c0_8, %c0_9], %7 {strides = array<i32>} : memref<1x24x32xf32, #tpu.memory_space<vmem>>, vector<1x24x32xf32>,
    return
  }
  func.func @transform_0(%arg0: i32) -> (i32, i32, i32) {
    %c0_i32 = arith.constant 0 : i32
    %c0_i32_0 = arith.constant 0 : i32
    %c0_i32_1 = arith.constant 0 : i32
    return %arg0, %c0_i32, %c0_i32_0 : i32, i32, i32
  }
  func.func @transform_1(%arg0: i32) -> (i32, i32) {
    %c0_i32 = arith.constant 0 : i32
    %c0_i32_0 = arith.constant 0 : i32
    %c0_i32_1 = arith.constant 0 : i32
    return %c0_i32, %c0_i32_0 : i32, i32
  }
  func.func @transform_2(%arg0: i32) -> (i32, i32, i32) {
    %c0_i32 = arith.constant 0 : i32
    %c0_i32_0 = arith.constant 0 : i32
    %c0_i32_1 = arith.constant 0 : i32
    %c0_i32_2 = arith.constant 0 : i32
    return %c0_i32, %c0_i32_0, %c0_i32_1 : i32, i32, i32
  }
  func.func @transform_3(%arg0: i32) -> (i32, i32, i32) {
    %c0_i32 = arith.constant 0 : i32
    %c0_i32_0 = arith.constant 0 : i32
    %c0_i32_1 = arith.constant 0 : i32
    return %arg0, %c0_i32, %c0_i32_0 : i32, i32, i32
  }
}

module attributes {stable_mosaic.version = 11 : i64} {
  func.func @_encoder_kernel(%arg0: i32, %arg1: i32, %arg2: memref<1x24x32xf32, #tpu.memory_space<vmem>>, %arg3: memref<1x32xf32, #tpu.memory_space<vmem>>, %arg4: memref<1x32xf32, #tpu.memory_space<vmem>>, %arg5: memref<32x96xbf16, #tpu.memory_space<vmem>>, %arg6: memref<1x96xf32, #tpu.memory_space<vmem>>, %arg7: memref<32x64xbf16, #tpu.memory_space<vmem>>, %arg8: memref<1x64xf32, #tpu.memory_space<vmem>>, %arg9: memref<64x32xbf16, #tpu.memory_space<vmem>>, %arg10: memref<1x32xf32, #tpu.memory_space<vmem>>, %arg11: memref<1x32xf32, #tpu.memory_space<vmem>>, %arg12: memref<1x32xf32, #tpu.memory_space<vmem>>, %arg13: memref<32x128xbf16, #tpu.memory_space<vmem>>, %arg14: memref<1x128xf32, #tpu.memory_space<vmem>>, %arg15: memref<1x1x128xf32, #tpu.memory_space<vmem>>, %arg16: memref<24x32xf32, #tpu.memory_space<vmem>>) attributes {dimension_semantics = [#tpu.dimension_semantics<parallel>, #tpu.dimension_semantics<arbitrary>], iteration_bounds = array<i64: 2, 2>, scalar_prefetch = 0 : i64, scratch_operands = 1 : i64, tpu.core_type = #tpu.core_type<tc>, window_params = [{transform_indices = @transform_0, window_bounds = array<i64: 1, 24, 32>}, {pipeline_mode = #tpu.pipeline_mode<synchronous>, transform_indices = @transform_1, window_bounds = array<i64: 1, 32>}, {pipeline_mode = #tpu.pipeline_mode<synchronous>, transform_indices = @transform_2, window_bounds = array<i64: 1, 32>}, {pipeline_mode = #tpu.pipeline_mode<synchronous>, transform_indices = @transform_3, window_bounds = array<i64: 32, 96>}, {pipeline_mode = #tpu.pipeline_mode<synchronous>, transform_indices = @transform_4, window_bounds = array<i64: 1, 96>}, {pipeline_mode = #tpu.pipeline_mode<synchronous>, transform_indices = @transform_5, window_bounds = array<i64: 32, 64>}, {pipeline_mode = #tpu.pipeline_mode<synchronous>, transform_indices = @transform_6, window_bounds = array<i64: 1, 64>}, {pipeline_mode = #tpu.pipeline_mode<synchronous>, transform_indices = @transform_7, window_bounds = array<i64: 64, 32>}, {pipeline_mode = #tpu.pipeline_mode<synchronous>, transform_indices = @transform_8, window_bounds = array<i64: 1, 32>}, {pipeline_mode = #tpu.pipeline_mode<synchronous>, transform_indices = @transform_9, window_bounds = array<i64: 1, 32>}, {pipeline_mode = #tpu.pipeline_mode<synchronous>, transform_indices = @transform_10, window_bounds = array<i64: 1, 32>}, {pipeline_mode = #tpu.pipeline_mode<synchronous>, transform_indices = @transform_11, window_bounds = array<i64: 32, 128>}, {pipeline_mode = #tpu.pipeline_mode<synchronous>, transform_indices = @transform_12, window_bounds = array<i64: 1, 128>}, {transform_indices = @transform_13, window_bounds = array<i64: 1, 1, 128>}]} {
    %c0_i32 = arith.constant 0 : i32
    %0 = arith.cmpi eq, %arg1, %c0_i32 : i32
    %1 = arith.extui %0 : i1 to i32
    %c0_i32_0 = arith.constant 0 : i32
    %2 = arith.cmpi ne, %1, %c0_i32_0 : i32
    scf.if %2 {
      %c0_66 = arith.constant 0 : index
      %c0_67 = arith.constant 0 : index
      %c0_68 = arith.constant 0 : index
      %203 = vector.load %arg2[%c0_66, %c0_67, %c0_68] : memref<1x24x32xf32, #tpu.memory_space<vmem>>, vector<1x24x32xf32>
      %204 = vector.shape_cast %203 : vector<1x24x32xf32> to vector<24x32xf32>
      %c0_69 = arith.constant 0 : index
      %c0_70 = arith.constant 0 : index
      %205 = vector.load %arg16[%c0_69, %c0_70] : memref<24x32xf32, #tpu.memory_space<vmem>>, vector<24x32xf32>
      tpu.vector_store %arg16[%c0_69, %c0_70], %204 {strides = array<i32>} : memref<24x32xf32, #tpu.memory_space<vmem>>, vector<24x32xf32>,
    } else {
    }
    %c0 = arith.constant 0 : index
    %c0_1 = arith.constant 0 : index
    %3 = vector.load %arg16[%c0, %c0_1] : memref<24x32xf32, #tpu.memory_space<vmem>>, vector<24x32xf32>
    %c0_2 = arith.constant 0 : index
    %c0_3 = arith.constant 0 : index
    %4 = vector.load %arg3[%c0_2, %c0_3] : memref<1x32xf32, #tpu.memory_space<vmem>>, vector<1x32xf32>
    %c0_4 = arith.constant 0 : index
    %c0_5 = arith.constant 0 : index
    %5 = vector.load %arg4[%c0_4, %c0_5] : memref<1x32xf32, #tpu.memory_space<vmem>>, vector<1x32xf32>
    %cst = arith.constant dense<0.000000e+00> : vector<24xf32>
    %6 = vector.multi_reduction <add>, %3, %cst [1] : vector<24x32xf32> to vector<24xf32>
    %7 = vector.shape_cast %6 : vector<24xf32> to vector<24x1xf32>
    %cst_6 = arith.constant 3.200000e+01 : f32
    %8 = vector.broadcast %cst_6 : f32 to vector<24x1xf32>
    %9 = arith.divf %7, %8 : vector<24x1xf32>
    %10 = vector.broadcast %9 : vector<24x1xf32> to vector<24x32xf32>
    %11 = arith.subf %3, %10 : vector<24x32xf32>
    %12 = arith.mulf %11, %11 : vector<24x32xf32>
    %cst_7 = arith.constant dense<0.000000e+00> : vector<24xf32>
    %13 = vector.multi_reduction <add>, %12, %cst_7 [1] : vector<24x32xf32> to vector<24xf32>
    %14 = vector.shape_cast %13 : vector<24xf32> to vector<24x1xf32>
    %cst_8 = arith.constant 3.200000e+01 : f32
    %15 = vector.broadcast %cst_8 : f32 to vector<24x1xf32>
    %16 = arith.divf %14, %15 : vector<24x1xf32>
    %17 = vector.broadcast %9 : vector<24x1xf32> to vector<24x32xf32>
    %18 = arith.subf %3, %17 : vector<24x32xf32>
    %cst_9 = arith.constant 9.99999974E-6 : f32
    %19 = vector.broadcast %cst_9 : f32 to vector<24x1xf32>
    %20 = arith.addf %16, %19 : vector<24x1xf32>
    %21 = math.rsqrt %20 : vector<24x1xf32>
    %22 = vector.broadcast %21 : vector<24x1xf32> to vector<24x32xf32>
    %23 = arith.mulf %18, %22 : vector<24x32xf32>
    %24 = vector.broadcast %4 : vector<1x32xf32> to vector<24x32xf32>
    %25 = arith.mulf %23, %24 : vector<24x32xf32>
    %26 = vector.broadcast %5 : vector<1x32xf32> to vector<24x32xf32>
    %27 = arith.addf %25, %26 : vector<24x32xf32>
    %28 = arith.truncf %27 : vector<24x32xf32> to vector<24x32xbf16>
    %c0_10 = arith.constant 0 : index
    %c0_11 = arith.constant 0 : index
    %29 = vector.load %arg5[%c0_10, %c0_11] : memref<32x96xbf16, #tpu.memory_space<vmem>>, vector<32x96xbf16>
    %cst_12 = arith.constant dense<0.000000e+00> : vector<24x96xf32>
    %30 = tpu.matmul %28, %29, %cst_12 {dimension_numbers = #tpu.dot_dimension_numbers<[1], [0], [0], [1], [0, 0, 1, 1], [], []>} : vector<24x32xbf16>, vector<32x96xbf16>, vector<24x96xf32> -> vector<24x96xf32>
    %c0_13 = arith.constant 0 : index
    %c0_14 = arith.constant 0 : index
    %31 = vector.load %arg6[%c0_13, %c0_14] : memref<1x96xf32, #tpu.memory_space<vmem>>, vector<1x96xf32>
    %32 = vector.broadcast %31 : vector<1x96xf32> to vector<24x96xf32>
    %33 = arith.addf %30, %32 : vector<24x96xf32>
    %34 = vector.extract_strided_slice %33 {offsets = [0, 0], sizes = [24, 32], strides = [1, 1]} : vector<24x96xf32> to vector<24x32xf32>
    %35 = arith.truncf %34 : vector<24x32xf32> to vector<24x32xbf16>
    %36 = vector.shape_cast %35 : vector<24x32xbf16> to vector<1x24x32xbf16>
    %37 = vector.extract_strided_slice %33 {offsets = [0, 32], sizes = [24, 32], strides = [1, 1]} : vector<24x96xf32> to vector<24x32xf32>
    %38 = arith.truncf %37 : vector<24x32xf32> to vector<24x32xbf16>
    %39 = vector.shape_cast %38 : vector<24x32xbf16> to vector<1x24x32xbf16>
    %40 = vector.extract_strided_slice %33 {offsets = [0, 64], sizes = [24, 32], strides = [1, 1]} : vector<24x96xf32> to vector<24x32xf32>
    %41 = arith.truncf %40 : vector<24x32xf32> to vector<24x32xbf16>
    %42 = vector.shape_cast %41 : vector<24x32xbf16> to vector<1x24x32xbf16>
    %43 = tpu.iota {dimensions = array<i32: 2>} : vector<1x1x24xi32>
    %c17_i32 = arith.constant 17 : i32
    %44 = vector.broadcast %c17_i32 : i32 to vector<1x1x24xi32>
    %45 = arith.cmpi slt, %43, %44 : vector<1x1x24xi32>
    %cst_15 = arith.constant 0.000000e+00 : f32
    %cst_16 = arith.constant -1.000000e+30 : f32
    %46 = vector.broadcast %cst_15 : f32 to vector<1x1x24xf32>
    %47 = vector.broadcast %cst_16 : f32 to vector<1x1x24xf32>
    %48 = arith.select %45, %46, %47 : vector<1x1x24xi1>, vector<1x1x24xf32>
    %49 = vector.extract_strided_slice %36 {offsets = [0, 0, 0], sizes = [1, 24, 8], strides = [1, 1, 1]} : vector<1x24x32xbf16> to vector<1x24x8xbf16>
    %50 = vector.extract_strided_slice %39 {offsets = [0, 0, 0], sizes = [1, 24, 8], strides = [1, 1, 1]} : vector<1x24x32xbf16> to vector<1x24x8xbf16>
    "tpu.trace_start"() <{level = 10 : i32, message = "bqd,bkd->bqk"}> : () -> ()
    %cst_17 = arith.constant dense<0.000000e+00> : vector<1x24x24xf32>
    %51 = tpu.matmul %49, %50, %cst_17 {dimension_numbers = #tpu.dot_dimension_numbers<[2], [2], [1], [1], [0, 0, 0, 1, 1, 1], [0], [0]>} : vector<1x24x8xbf16>, vector<1x24x8xbf16>, vector<1x24x24xf32> -> vector<1x24x24xf32>
    "tpu.trace_stop"() : () -> ()
    %52 = vector.broadcast %48 : vector<1x1x24xf32> to vector<1x24x24xf32>
    %53 = arith.addf %51, %52 : vector<1x24x24xf32>
    %cst_18 = arith.constant dense<0xFF800000> : vector<1x24xf32>
    %54 = vector.multi_reduction <maximumf>, %53, %cst_18 [2] : vector<1x24x24xf32> to vector<1x24xf32>
    %55 = vector.shape_cast %54 : vector<1x24xf32> to vector<1x24x1xf32>
    %56 = vector.broadcast %55 : vector<1x24x1xf32> to vector<1x24x24xf32>
    %57 = arith.subf %53, %56 : vector<1x24x24xf32>
    %58 = math.exp %57 : vector<1x24x24xf32>
    %cst_19 = arith.constant dense<0.000000e+00> : vector<1x24xf32>
    %59 = vector.multi_reduction <add>, %58, %cst_19 [2] : vector<1x24x24xf32> to vector<1x24xf32>
    %60 = vector.shape_cast %59 : vector<1x24xf32> to vector<1x24x1xf32>
    %61 = tpu.reciprocal %60 {approx = true} : vector<1x24x1xf32> -> vector<1x24x1xf32>
    %62 = vector.broadcast %61 : vector<1x24x1xf32> to vector<1x24x24xf32>
    %63 = arith.mulf %58, %62 : vector<1x24x24xf32>
    %64 = arith.truncf %63 : vector<1x24x24xf32> to vector<1x24x24xbf16>
    %65 = vector.extract_strided_slice %42 {offsets = [0, 0, 0], sizes = [1, 24, 8], strides = [1, 1, 1]} : vector<1x24x32xbf16> to vector<1x24x8xbf16>
    "tpu.trace_start"() <{level = 10 : i32, message = "bqk,bkd->bqd"}> : () -> ()
    %cst_20 = arith.constant dense<0.000000e+00> : vector<1x24x8xf32>
    %66 = tpu.matmul %64, %65, %cst_20 {dimension_numbers = #tpu.dot_dimension_numbers<[2], [1], [1], [2], [0, 0, 0, 1, 1, 2], [0], [0]>} : vector<1x24x24xbf16>, vector<1x24x8xbf16>, vector<1x24x8xf32> -> vector<1x24x8xf32>
    "tpu.trace_stop"() : () -> ()
    %67 = vector.extract_strided_slice %36 {offsets = [0, 0, 8], sizes = [1, 24, 8], strides = [1, 1, 1]} : vector<1x24x32xbf16> to vector<1x24x8xbf16>
    %68 = vector.extract_strided_slice %39 {offsets = [0, 0, 8], sizes = [1, 24, 8], strides = [1, 1, 1]} : vector<1x24x32xbf16> to vector<1x24x8xbf16>
    "tpu.trace_start"() <{level = 10 : i32, message = "bqd,bkd->bqk"}> : () -> ()
    %cst_21 = arith.constant dense<0.000000e+00> : vector<1x24x24xf32>
    %69 = tpu.matmul %67, %68, %cst_21 {dimension_numbers = #tpu.dot_dimension_numbers<[2], [2], [1], [1], [0, 0, 0, 1, 1, 1], [0], [0]>} : vector<1x24x8xbf16>, vector<1x24x8xbf16>, vector<1x24x24xf32> -> vector<1x24x24xf32>
    "tpu.trace_stop"() : () -> ()
    %70 = vector.broadcast %48 : vector<1x1x24xf32> to vector<1x24x24xf32>
    %71 = arith.addf %69, %70 : vector<1x24x24xf32>
    %cst_22 = arith.constant dense<0xFF800000> : vector<1x24xf32>
    %72 = vector.multi_reduction <maximumf>, %71, %cst_22 [2] : vector<1x24x24xf32> to vector<1x24xf32>
    %73 = vector.shape_cast %72 : vector<1x24xf32> to vector<1x24x1xf32>
    %74 = vector.broadcast %73 : vector<1x24x1xf32> to vector<1x24x24xf32>
    %75 = arith.subf %71, %74 : vector<1x24x24xf32>
    %76 = math.exp %75 : vector<1x24x24xf32>
    %cst_23 = arith.constant dense<0.000000e+00> : vector<1x24xf32>
    %77 = vector.multi_reduction <add>, %76, %cst_23 [2] : vector<1x24x24xf32> to vector<1x24xf32>
    %78 = vector.shape_cast %77 : vector<1x24xf32> to vector<1x24x1xf32>
    %79 = tpu.reciprocal %78 {approx = true} : vector<1x24x1xf32> -> vector<1x24x1xf32>
    %80 = vector.broadcast %79 : vector<1x24x1xf32> to vector<1x24x24xf32>
    %81 = arith.mulf %76, %80 : vector<1x24x24xf32>
    %82 = arith.truncf %81 : vector<1x24x24xf32> to vector<1x24x24xbf16>
    %83 = vector.extract_strided_slice %42 {offsets = [0, 0, 8], sizes = [1, 24, 8], strides = [1, 1, 1]} : vector<1x24x32xbf16> to vector<1x24x8xbf16>
    "tpu.trace_start"() <{level = 10 : i32, message = "bqk,bkd->bqd"}> : () -> ()
    %cst_24 = arith.constant dense<0.000000e+00> : vector<1x24x8xf32>
    %84 = tpu.matmul %82, %83, %cst_24 {dimension_numbers = #tpu.dot_dimension_numbers<[2], [1], [1], [2], [0, 0, 0, 1, 1, 2], [0], [0]>} : vector<1x24x24xbf16>, vector<1x24x8xbf16>, vector<1x24x8xf32> -> vector<1x24x8xf32>
    "tpu.trace_stop"() : () -> ()
    %85 = vector.extract_strided_slice %36 {offsets = [0, 0, 16], sizes = [1, 24, 8], strides = [1, 1, 1]} : vector<1x24x32xbf16> to vector<1x24x8xbf16>
    %86 = vector.extract_strided_slice %39 {offsets = [0, 0, 16], sizes = [1, 24, 8], strides = [1, 1, 1]} : vector<1x24x32xbf16> to vector<1x24x8xbf16>
    "tpu.trace_start"() <{level = 10 : i32, message = "bqd,bkd->bqk"}> : () -> ()
    %cst_25 = arith.constant dense<0.000000e+00> : vector<1x24x24xf32>
    %87 = tpu.matmul %85, %86, %cst_25 {dimension_numbers = #tpu.dot_dimension_numbers<[2], [2], [1], [1], [0, 0, 0, 1, 1, 1], [0], [0]>} : vector<1x24x8xbf16>, vector<1x24x8xbf16>, vector<1x24x24xf32> -> vector<1x24x24xf32>
    "tpu.trace_stop"() : () -> ()
    %88 = vector.broadcast %48 : vector<1x1x24xf32> to vector<1x24x24xf32>
    %89 = arith.addf %87, %88 : vector<1x24x24xf32>
    %cst_26 = arith.constant dense<0xFF800000> : vector<1x24xf32>
    %90 = vector.multi_reduction <maximumf>, %89, %cst_26 [2] : vector<1x24x24xf32> to vector<1x24xf32>
    %91 = vector.shape_cast %90 : vector<1x24xf32> to vector<1x24x1xf32>
    %92 = vector.broadcast %91 : vector<1x24x1xf32> to vector<1x24x24xf32>
    %93 = arith.subf %89, %92 : vector<1x24x24xf32>
    %94 = math.exp %93 : vector<1x24x24xf32>
    %cst_27 = arith.constant dense<0.000000e+00> : vector<1x24xf32>
    %95 = vector.multi_reduction <add>, %94, %cst_27 [2] : vector<1x24x24xf32> to vector<1x24xf32>
    %96 = vector.shape_cast %95 : vector<1x24xf32> to vector<1x24x1xf32>
    %97 = tpu.reciprocal %96 {approx = true} : vector<1x24x1xf32> -> vector<1x24x1xf32>
    %98 = vector.broadcast %97 : vector<1x24x1xf32> to vector<1x24x24xf32>
    %99 = arith.mulf %94, %98 : vector<1x24x24xf32>
    %100 = arith.truncf %99 : vector<1x24x24xf32> to vector<1x24x24xbf16>
    %101 = vector.extract_strided_slice %42 {offsets = [0, 0, 16], sizes = [1, 24, 8], strides = [1, 1, 1]} : vector<1x24x32xbf16> to vector<1x24x8xbf16>
    "tpu.trace_start"() <{level = 10 : i32, message = "bqk,bkd->bqd"}> : () -> ()
    %cst_28 = arith.constant dense<0.000000e+00> : vector<1x24x8xf32>
    %102 = tpu.matmul %100, %101, %cst_28 {dimension_numbers = #tpu.dot_dimension_numbers<[2], [1], [1], [2], [0, 0, 0, 1, 1, 2], [0], [0]>} : vector<1x24x24xbf16>, vector<1x24x8xbf16>, vector<1x24x8xf32> -> vector<1x24x8xf32>
    "tpu.trace_stop"() : () -> ()
    %103 = vector.extract_strided_slice %36 {offsets = [0, 0, 24], sizes = [1, 24, 8], strides = [1, 1, 1]} : vector<1x24x32xbf16> to vector<1x24x8xbf16>
    %104 = vector.extract_strided_slice %39 {offsets = [0, 0, 24], sizes = [1, 24, 8], strides = [1, 1, 1]} : vector<1x24x32xbf16> to vector<1x24x8xbf16>
    "tpu.trace_start"() <{level = 10 : i32, message = "bqd,bkd->bqk"}> : () -> ()
    %cst_29 = arith.constant dense<0.000000e+00> : vector<1x24x24xf32>
    %105 = tpu.matmul %103, %104, %cst_29 {dimension_numbers = #tpu.dot_dimension_numbers<[2], [2], [1], [1], [0, 0, 0, 1, 1, 1], [0], [0]>} : vector<1x24x8xbf16>, vector<1x24x8xbf16>, vector<1x24x24xf32> -> vector<1x24x24xf32>
    "tpu.trace_stop"() : () -> ()
    %106 = vector.broadcast %48 : vector<1x1x24xf32> to vector<1x24x24xf32>
    %107 = arith.addf %105, %106 : vector<1x24x24xf32>
    %cst_30 = arith.constant dense<0xFF800000> : vector<1x24xf32>
    %108 = vector.multi_reduction <maximumf>, %107, %cst_30 [2] : vector<1x24x24xf32> to vector<1x24xf32>
    %109 = vector.shape_cast %108 : vector<1x24xf32> to vector<1x24x1xf32>
    %110 = vector.broadcast %109 : vector<1x24x1xf32> to vector<1x24x24xf32>
    %111 = arith.subf %107, %110 : vector<1x24x24xf32>
    %112 = math.exp %111 : vector<1x24x24xf32>
    %cst_31 = arith.constant dense<0.000000e+00> : vector<1x24xf32>
    %113 = vector.multi_reduction <add>, %112, %cst_31 [2] : vector<1x24x24xf32> to vector<1x24xf32>
    %114 = vector.shape_cast %113 : vector<1x24xf32> to vector<1x24x1xf32>
    %115 = tpu.reciprocal %114 {approx = true} : vector<1x24x1xf32> -> vector<1x24x1xf32>
    %116 = vector.broadcast %115 : vector<1x24x1xf32> to vector<1x24x24xf32>
    %117 = arith.mulf %112, %116 : vector<1x24x24xf32>
    %118 = arith.truncf %117 : vector<1x24x24xf32> to vector<1x24x24xbf16>
    %119 = vector.extract_strided_slice %42 {offsets = [0, 0, 24], sizes = [1, 24, 8], strides = [1, 1, 1]} : vector<1x24x32xbf16> to vector<1x24x8xbf16>
    "tpu.trace_start"() <{level = 10 : i32, message = "bqk,bkd->bqd"}> : () -> ()
    %cst_32 = arith.constant dense<0.000000e+00> : vector<1x24x8xf32>
    %120 = tpu.matmul %118, %119, %cst_32 {dimension_numbers = #tpu.dot_dimension_numbers<[2], [1], [1], [2], [0, 0, 0, 1, 1, 2], [0], [0]>} : vector<1x24x24xbf16>, vector<1x24x8xbf16>, vector<1x24x8xf32> -> vector<1x24x8xf32>
    "tpu.trace_stop"() : () -> ()
    %121 = tpu.concatenate %66, %84, %102, %120 in 2 : vector<1x24x8xf32>, vector<1x24x8xf32>, vector<1x24x8xf32>, vector<1x24x8xf32> -> vector<1x24x32xf32>
    %122 = vector.shape_cast %121 : vector<1x24x32xf32> to vector<24x32xf32>
    %123 = arith.addf %3, %122 : vector<24x32xf32>
    %cst_33 = arith.constant dense<0.000000e+00> : vector<24xf32>
    %124 = vector.multi_reduction <add>, %123, %cst_33 [1] : vector<24x32xf32> to vector<24xf32>
    %125 = vector.shape_cast %124 : vector<24xf32> to vector<24x1xf32>
    %cst_34 = arith.constant 3.200000e+01 : f32
    %126 = vector.broadcast %cst_34 : f32 to vector<24x1xf32>
    %127 = arith.divf %125, %126 : vector<24x1xf32>
    %128 = vector.broadcast %127 : vector<24x1xf32> to vector<24x32xf32>
    %129 = arith.subf %123, %128 : vector<24x32xf32>
    %130 = arith.mulf %129, %129 : vector<24x32xf32>
    %cst_35 = arith.constant dense<0.000000e+00> : vector<24xf32>
    %131 = vector.multi_reduction <add>, %130, %cst_35 [1] : vector<24x32xf32> to vector<24xf32>
    %132 = vector.shape_cast %131 : vector<24xf32> to vector<24x1xf32>
    %cst_36 = arith.constant 3.200000e+01 : f32
    %133 = vector.broadcast %cst_36 : f32 to vector<24x1xf32>
    %134 = arith.divf %132, %133 : vector<24x1xf32>
    %135 = vector.broadcast %127 : vector<24x1xf32> to vector<24x32xf32>
    %136 = arith.subf %123, %135 : vector<24x32xf32>
    %cst_37 = arith.constant 9.99999974E-6 : f32
    %137 = vector.broadcast %cst_37 : f32 to vector<24x1xf32>
    %138 = arith.addf %134, %137 : vector<24x1xf32>
    %139 = math.rsqrt %138 : vector<24x1xf32>
    %140 = vector.broadcast %139 : vector<24x1xf32> to vector<24x32xf32>
    %141 = arith.mulf %136, %140 : vector<24x32xf32>
    %142 = vector.broadcast %4 : vector<1x32xf32> to vector<24x32xf32>
    %143 = arith.mulf %141, %142 : vector<24x32xf32>
    %144 = vector.broadcast %5 : vector<1x32xf32> to vector<24x32xf32>
    %145 = arith.addf %143, %144 : vector<24x32xf32>
    %146 = arith.truncf %145 : vector<24x32xf32> to vector<24x32xbf16>
    %c0_38 = arith.constant 0 : index
    %c0_39 = arith.constant 0 : index
    %147 = vector.load %arg7[%c0_38, %c0_39] : memref<32x64xbf16, #tpu.memory_space<vmem>>, vector<32x64xbf16>
    %cst_40 = arith.constant dense<0.000000e+00> : vector<24x64xf32>
    %148 = tpu.matmul %146, %147, %cst_40 {dimension_numbers = #tpu.dot_dimension_numbers<[1], [0], [0], [1], [0, 0, 1, 1], [], []>} : vector<24x32xbf16>, vector<32x64xbf16>, vector<24x64xf32> -> vector<24x64xf32>
    %c0_41 = arith.constant 0 : index
    %c0_42 = arith.constant 0 : index
    %149 = vector.load %arg8[%c0_41, %c0_42] : memref<1x64xf32, #tpu.memory_space<vmem>>, vector<1x64xf32>
    %150 = vector.broadcast %149 : vector<1x64xf32> to vector<24x64xf32>
    %151 = arith.addf %148, %150 : vector<24x64xf32>
    %cst_43 = arith.constant 5.000000e-01 : f32
    %152 = vector.broadcast %cst_43 : f32 to vector<24x64xf32>
    %153 = arith.mulf %152, %151 : vector<24x64xf32>
    %cst_44 = arith.constant 0.707106769 : f32
    %154 = vector.broadcast %cst_44 : f32 to vector<24x64xf32>
    %155 = arith.mulf %151, %154 : vector<24x64xf32>
    %156 = math.absf %155 : vector<24x64xf32>
    %cst_45 = arith.constant 0.327591091 : f32
    %157 = vector.broadcast %cst_45 : f32 to vector<24x64xf32>
    %158 = arith.mulf %157, %156 : vector<24x64xf32>
    %cst_46 = arith.constant 1.000000e+00 : f32
    %159 = vector.broadcast %cst_46 : f32 to vector<24x64xf32>
    %160 = arith.addf %159, %158 : vector<24x64xf32>
    %cst_47 = arith.constant 1.000000e+00 : f32
    %161 = vector.broadcast %cst_47 : f32 to vector<24x64xf32>
    %162 = arith.divf %161, %160 : vector<24x64xf32>
    %cst_48 = arith.constant 1.06140542 : f32
    %163 = vector.broadcast %cst_48 : f32 to vector<24x64xf32>
    %164 = arith.mulf %163, %162 : vector<24x64xf32>
    %cst_49 = arith.constant -1.45315206 : f32
    %165 = vector.broadcast %cst_49 : f32 to vector<24x64xf32>
    %166 = arith.addf %164, %165 : vector<24x64xf32>
    %167 = arith.mulf %166, %162 : vector<24x64xf32>
    %cst_50 = arith.constant 1.42141378 : f32
    %168 = vector.broadcast %cst_50 : f32 to vector<24x64xf32>
    %169 = arith.addf %167, %168 : vector<24x64xf32>
    %170 = arith.mulf %169, %162 : vector<24x64xf32>
    %cst_51 = arith.constant -0.284496725 : f32
    %171 = vector.broadcast %cst_51 : f32 to vector<24x64xf32>
    %172 = arith.addf %170, %171 : vector<24x64xf32>
    %173 = arith.mulf %172, %162 : vector<24x64xf32>
    %cst_52 = arith.constant 0.254829586 : f32
    %174 = vector.broadcast %cst_52 : f32 to vector<24x64xf32>
    %175 = arith.addf %173, %174 : vector<24x64xf32>
    %176 = arith.mulf %175, %162 : vector<24x64xf32>
    %cst_53 = arith.constant 0.000000e+00 : f32
    %177 = vector.broadcast %cst_53 : f32 to vector<24x64xf32>
    %178 = arith.subf %177, %156 : vector<24x64xf32>
    %179 = arith.mulf %178, %156 : vector<24x64xf32>
    %180 = math.exp %179 : vector<24x64xf32>
    %181 = arith.mulf %176, %180 : vector<24x64xf32>
    %cst_54 = arith.constant 1.000000e+00 : f32
    %182 = vector.broadcast %cst_54 : f32 to vector<24x64xf32>
    %183 = arith.subf %182, %181 : vector<24x64xf32>
    %cst_55 = arith.constant 0.000000e+00 : f32
    %184 = vector.broadcast %cst_55 : f32 to vector<24x64xf32>
    %185 = arith.cmpf olt, %155, %184 : vector<24x64xf32>
    %cst_56 = arith.constant 0.000000e+00 : f32
    %186 = vector.broadcast %cst_56 : f32 to vector<24x64xf32>
    %187 = arith.subf %186, %183 : vector<24x64xf32>
    %188 = arith.select %185, %187, %183 : vector<24x64xi1>, vector<24x64xf32>
    %cst_57 = arith.constant 1.000000e+00 : f32
    %189 = vector.broadcast %cst_57 : f32 to vector<24x64xf32>
    %190 = arith.addf %189, %188 : vector<24x64xf32>
    %191 = arith.mulf %153, %190 : vector<24x64xf32>
    %192 = arith.truncf %191 : vector<24x64xf32> to vector<24x64xbf16>
    %c0_58 = arith.constant 0 : index
    %c0_59 = arith.constant 0 : index
    %193 = vector.load %arg9[%c0_58, %c0_59] : memref<64x32xbf16, #tpu.memory_space<vmem>>, vector<64x32xbf16>
    %cst_60 = arith.constant dense<0.000000e+00> : vector<24x32xf32>
    %194 = tpu.matmul %192, %193, %cst_60 {dimension_numbers = #tpu.dot_dimension_numbers<[1], [0], [0], [1], [0, 0, 1, 1], [], []>} : vector<24x64xbf16>, vector<64x32xbf16>, vector<24x32xf32> -> vector<24x32xf32>
    %c0_61 = arith.constant 0 : index
    %c0_62 = arith.constant 0 : index
    %195 = vector.load %arg10[%c0_61, %c0_62] : memref<1x32xf32, #tpu.memory_space<vmem>>, vector<1x32xf32>
    %196 = vector.broadcast %195 : vector<1x32xf32> to vector<24x32xf32>
    %197 = arith.addf %194, %196 : vector<24x32xf32>
    %198 = arith.addf %123, %197 : vector<24x32xf32>
    %c0_63 = arith.constant 0 : index
    %c0_64 = arith.constant 0 : index
    %199 = vector.load %arg16[%c0_63, %c0_64] : memref<24x32xf32, #tpu.memory_space<vmem>>, vector<24x32xf32>
    tpu.vector_store %arg16[%c0_63, %c0_64], %198 {strides = array<i32>} : memref<24x32xf32, #tpu.memory_space<vmem>>, vector<24x32xf32>,
    %c1_i32 = arith.constant 1 : i32
    %200 = arith.cmpi eq, %arg1, %c1_i32 : i32
    %201 = arith.extui %200 : i1 to i32
    %c0_i32_65 = arith.constant 0 : i32
    %202 = arith.cmpi ne, %201, %c0_i32_65 : i32
    scf.if %202 {
      %203 = vector.shape_cast %198 : vector<24x32xf32> to vector<1x24x32xf32>
      %204 = vector.extract_strided_slice %203 {offsets = [0, 0, 0], sizes = [1, 1, 32], strides = [1, 1, 1]} : vector<1x24x32xf32> to vector<1x1x32xf32>
      %205 = vector.shape_cast %204 : vector<1x1x32xf32> to vector<1x32xf32>
      %c0_66 = arith.constant 0 : index
      %c0_67 = arith.constant 0 : index
      %206 = vector.load %arg11[%c0_66, %c0_67] : memref<1x32xf32, #tpu.memory_space<vmem>>, vector<1x32xf32>
      %c0_68 = arith.constant 0 : index
      %c0_69 = arith.constant 0 : index
      %207 = vector.load %arg12[%c0_68, %c0_69] : memref<1x32xf32, #tpu.memory_space<vmem>>, vector<1x32xf32>
      %cst_70 = arith.constant dense<0.000000e+00> : vector<1xf32>
      %208 = vector.multi_reduction <add>, %205, %cst_70 [1] : vector<1x32xf32> to vector<1xf32>
      %209 = vector.shape_cast %208 : vector<1xf32> to vector<1x1xf32>
      %cst_71 = arith.constant 3.200000e+01 : f32
      %210 = vector.broadcast %cst_71 : f32 to vector<1x1xf32>
      %211 = arith.divf %209, %210 : vector<1x1xf32>
      %212 = vector.broadcast %211 : vector<1x1xf32> to vector<1x32xf32>
      %213 = arith.subf %205, %212 : vector<1x32xf32>
      %214 = arith.mulf %213, %213 : vector<1x32xf32>
      %cst_72 = arith.constant dense<0.000000e+00> : vector<1xf32>
      %215 = vector.multi_reduction <add>, %214, %cst_72 [1] : vector<1x32xf32> to vector<1xf32>
      %216 = vector.shape_cast %215 : vector<1xf32> to vector<1x1xf32>
      %cst_73 = arith.constant 3.200000e+01 : f32
      %217 = vector.broadcast %cst_73 : f32 to vector<1x1xf32>
      %218 = arith.divf %216, %217 : vector<1x1xf32>
      %219 = vector.broadcast %211 : vector<1x1xf32> to vector<1x32xf32>
      %220 = arith.subf %205, %219 : vector<1x32xf32>
      %cst_74 = arith.constant 9.99999974E-6 : f32
      %221 = vector.broadcast %cst_74 : f32 to vector<1x1xf32>
      %222 = arith.addf %218, %221 : vector<1x1xf32>
      %223 = math.rsqrt %222 : vector<1x1xf32>
      %224 = vector.broadcast %223 : vector<1x1xf32> to vector<1x32xf32>
      %225 = arith.mulf %220, %224 : vector<1x32xf32>
      %226 = arith.mulf %225, %206 : vector<1x32xf32>
      %227 = arith.addf %226, %207 : vector<1x32xf32>
      %228 = arith.truncf %227 : vector<1x32xf32> to vector<1x32xbf16>
      %c0_75 = arith.constant 0 : index
      %c0_76 = arith.constant 0 : index
      %229 = vector.load %arg13[%c0_75, %c0_76] : memref<32x128xbf16, #tpu.memory_space<vmem>>, vector<32x128xbf16>
      %cst_77 = arith.constant dense<0.000000e+00> : vector<1x128xf32>
      %230 = tpu.matmul %228, %229, %cst_77 {dimension_numbers = #tpu.dot_dimension_numbers<[1], [0], [0], [1], [0, 0, 1, 1], [], []>} : vector<1x32xbf16>, vector<32x128xbf16>, vector<1x128xf32> -> vector<1x128xf32>
      %c0_78 = arith.constant 0 : index
      %c0_79 = arith.constant 0 : index
      %231 = vector.load %arg14[%c0_78, %c0_79] : memref<1x128xf32, #tpu.memory_space<vmem>>, vector<1x128xf32>
      %232 = arith.addf %230, %231 : vector<1x128xf32>
      %c0_80 = arith.constant 0 : index
      %c0_81 = arith.constant 0 : index
      %c0_82 = arith.constant 0 : index
      %233 = vector.load %arg15[%c0_80, %c0_81, %c0_82] : memref<1x1x128xf32, #tpu.memory_space<vmem>>, vector<1x1x128xf32>
      %234 = vector.shape_cast %233 : vector<1x1x128xf32> to vector<1x128xf32>
      %235 = vector.shape_cast %232 : vector<1x128xf32> to vector<1x1x128xf32>
      tpu.vector_store %arg15[%c0_80, %c0_81, %c0_82], %235 {strides = array<i32>} : memref<1x1x128xf32, #tpu.memory_space<vmem>>, vector<1x1x128xf32>,
    } else {
    }
    return
  }
  func.func @transform_0(%arg0: i32, %arg1: i32) -> (i32, i32, i32) {
    %c0_i32 = arith.constant 0 : i32
    %c0_i32_0 = arith.constant 0 : i32
    %c0_i32_1 = arith.constant 0 : i32
    return %arg0, %c0_i32, %c0_i32_0 : i32, i32, i32
  }
  func.func @transform_1(%arg0: i32, %arg1: i32) -> (i32, i32) {
    %c0_i32 = arith.constant 0 : i32
    %c0_i32_0 = arith.constant 0 : i32
    %c0_i32_1 = arith.constant 0 : i32
    return %c0_i32, %c0_i32_0 : i32, i32
  }
  func.func @transform_2(%arg0: i32, %arg1: i32) -> (i32, i32) {
    %c0_i32 = arith.constant 0 : i32
    %c0_i32_0 = arith.constant 0 : i32
    %c0_i32_1 = arith.constant 0 : i32
    return %c0_i32, %c0_i32_0 : i32, i32
  }
  func.func @transform_3(%arg0: i32, %arg1: i32) -> (i32, i32) {
    %c0_i32 = arith.constant 0 : i32
    %c0_i32_0 = arith.constant 0 : i32
    %c0_i32_1 = arith.constant 0 : i32
    return %c0_i32, %c0_i32_0 : i32, i32
  }
  func.func @transform_4(%arg0: i32, %arg1: i32) -> (i32, i32) {
    %c0_i32 = arith.constant 0 : i32
    %c0_i32_0 = arith.constant 0 : i32
    %c0_i32_1 = arith.constant 0 : i32
    return %c0_i32, %c0_i32_0 : i32, i32
  }
  func.func @transform_5(%arg0: i32, %arg1: i32) -> (i32, i32) {
    %c0_i32 = arith.constant 0 : i32
    %c0_i32_0 = arith.constant 0 : i32
    %c0_i32_1 = arith.constant 0 : i32
    return %c0_i32, %c0_i32_0 : i32, i32
  }
  func.func @transform_6(%arg0: i32, %arg1: i32) -> (i32, i32) {
    %c0_i32 = arith.constant 0 : i32
    %c0_i32_0 = arith.constant 0 : i32
    %c0_i32_1 = arith.constant 0 : i32
    return %c0_i32, %c0_i32_0 : i32, i32
  }
  func.func @transform_7(%arg0: i32, %arg1: i32) -> (i32, i32) {
    %c0_i32 = arith.constant 0 : i32
    %c0_i32_0 = arith.constant 0 : i32
    %c0_i32_1 = arith.constant 0 : i32
    return %c0_i32, %c0_i32_0 : i32, i32
  }
  func.func @transform_8(%arg0: i32, %arg1: i32) -> (i32, i32) {
    %c0_i32 = arith.constant 0 : i32
    %c0_i32_0 = arith.constant 0 : i32
    %c0_i32_1 = arith.constant 0 : i32
    return %c0_i32, %c0_i32_0 : i32, i32
  }
  func.func @transform_9(%arg0: i32, %arg1: i32) -> (i32, i32) {
    %c0_i32 = arith.constant 0 : i32
    %c0_i32_0 = arith.constant 0 : i32
    %c0_i32_1 = arith.constant 0 : i32
    return %c0_i32, %c0_i32_0 : i32, i32
  }
  func.func @transform_10(%arg0: i32, %arg1: i32) -> (i32, i32) {
    %c0_i32 = arith.constant 0 : i32
    %c0_i32_0 = arith.constant 0 : i32
    %c0_i32_1 = arith.constant 0 : i32
    return %c0_i32, %c0_i32_0 : i32, i32
  }
  func.func @transform_11(%arg0: i32, %arg1: i32) -> (i32, i32) {
    %c0_i32 = arith.constant 0 : i32
    %c0_i32_0 = arith.constant 0 : i32
    %c0_i32_1 = arith.constant 0 : i32
    return %c0_i32, %c0_i32_0 : i32, i32
  }
  func.func @transform_12(%arg0: i32, %arg1: i32) -> (i32, i32) {
    %c0_i32 = arith.constant 0 : i32
    %c0_i32_0 = arith.constant 0 : i32
    %c0_i32_1 = arith.constant 0 : i32
    return %c0_i32, %c0_i32_0 : i32, i32
  }
  func.func @transform_13(%arg0: i32, %arg1: i32) -> (i32, i32, i32) {
    %c0_i32 = arith.constant 0 : i32
    %c0_i32_0 = arith.constant 0 : i32
    %c0_i32_1 = arith.constant 0 : i32
    return %arg0, %c0_i32, %c0_i32_0 : i32, i32, i32
  }
}

</mosaic_0001>

<bundles_post_ra>
// kernel: vit_forward.2
= control target key start
LH: loop header
LB: loop body
LE: loop exit
PB: predicated region body
PF: predicated region fallthrough
CT: control target
= control target key end

     0   :  { %s403_s12 = smov 0   ;;  %s441_s0 = inlined_call_operand.vmem [shape: f32[2,24,64], index: 0, kind: input, shape index: {}]   ;;  %s442_s1 = inlined_call_operand.vmem [shape: bf16[64,32], index: 1, kind: input, shape index: {}]   ;;  %s443_s2 = inlined_call_operand.vmem [shape: f32[1,24,32], index: 2, kind: input, shape index: {}]   ;;  %s444_s3 = inlined_call_operand.vmem [shape: f32[2,24,32], index: 3, kind: output, shape index: {}]  }
   0x1 LB: > { %s329_s13 = sadd.s32 4294967295, %s381_s12   ;;  %p333_p0 = scmp.ge.s32.totalorder %s381_s12, 1  ;;  %s381_s12 = sphi %s403_s12, %s13_s12  }
   0x2   : > { %p137_p1 = scmp.lt.s32.totalorder %s381_s12, 3 }
   0x4   : > { %p138_p2 = pnand %p333_p0, %p137_p1 }
   0x5   : > { %p161_p3 = scmp.lt.s32.totalorder (!%p138_p2), %s329_s13, 1 }
   0x6   : > { %141 = sbr.rel (%p138_p2) target bundleno = 230 (0xe6), region = 32 }
   0xb   : > { %v371_v0 = vld [vmem:[%s442_s1 + $0x18] sm:$0xff]   ;;  %v372_v1 = vld [vmem:[%s442_s1 + $0x10] sm:$0xff]   ;;  %s446_s13 = smov (!%p161_p3, %s329_s13), 1  ;;  %v373_v2 = vld [vmem:[%s442_s1 + $0x8] sm:$0xff]   ;;  %vm209_vm0 = vcmask 523264   ;;  %vm270_vm1 = vcmask 261120  }
   0xc   : > { %350 = vmatprep.subr.bf16.mxu0 %v371_v0  ;;  %s362_s20 = smul.u32 24, %s446_s13  ;;  %v374_v5 = vld [vmem:[%s442_s1] sm:$0xff]   ;;  %v266_v9 = vld [vmem:[%s443_s2 + $0x10] sm:$0xff]  ;;  %v265_v16 = vld [vmem:[%s443_s2 + $0x8] sm:$0xff] }
   0xd   : > { %351 = vmatpush3.bf16.msra.mxu0 %v371_v0  ;;  %v264_v11 = vld [vmem:[%s443_s2] sm:$0xff] }
   0xe   : > { %352 = vmatprep.subr.bf16.mxu0 %v372_v1  ;;  %s165_s23 = scalar_lea.vmem %s441_s0, %s362_s20  ;;  %s170_s30 = scalar_lea.vmem %s444_s3, %s362_s20 }
   0xf   : > { %v172_v3 = vld [vmem:[%s165_s23] sm:$0xff]  ;;  %v173_v4 = vld [vmem:[%s165_s23 + $0x8] sm:$0xff]  ;;  %v174_v7 = vld [vmem:[%s165_s23 + $0x10] sm:$0xff] }
  0x10   : > { %v175_v6 = vpack.c.bf16 %v173_v4, %v172_v3  ;;  %v176_v8 = vpack.c.bf16 %v174_v7, %v174_v7 }
  0x11   : > { %353 = vmatpush3.bf16.msra.mxu0 %v372_v1 }
  0x12   : > { %354 = vmatprep.subr.bf16.mxu0 %v373_v2  ;;  %358 = vmatprep.mubr.msk.bf16.mxu0 %vm209_vm0, %v175_v6 }
  0x15   : > { %355 = vmatpush3.bf16.msra.mxu0 %v373_v2 }
  0x16   : > { %356 = vmatprep.subr.bf16.mxu0 %v374_v5 }
  0x19   : > { %357 = vmatpush3.bf16.msra.mxu0 %v374_v5 }
  0x1c   : > { %359 = vmatmul.mubr.msk.bf16.vlgmr.msra.gmra.mxu0 %vm209_vm0, %v176_v8 }
  0xdc   : > { %v360_v10 = vpop.f32.mrf.mxu0 }
  0xdd   : > { %v269_v12 = vadd.f32 %v360_v10, %v266_v9 }
  0xde   : > { %v250_v13 = vpop.f32.mrf.mxu0 }
  0xdf   : > { %273 = vst.msk [vmem:[%s170_s30 + $0x10] sm:$0xff] %vm270_vm1, %v269_v12  ;;  %v267_v14 = vadd.f32 %v264_v11, %v250_v13 }
  0xe0   : > { %v361_v15 = vpop.f32.mrf.mxu0 }
  0xe1   : > { %271 = vst.msk [vmem:[%s170_s30] sm:$0xff] %vm270_vm1, %v267_v14 }
  0xe2   : > { %v253_v17 = vpop.f32.mrf.mxu0 }
  0xe3   : > { %v268_v18 = vadd.f32 %v265_v16, %v253_v17 }
  0xe5   : > { %272 = vst.msk [vmem:[%s170_s30 + $0x8] sm:$0xff] %vm270_vm1, %v268_v18 }
  0xe6 PF: > { %s13_s12 = sadd.s32 1, %s381_s12  }
  0xe7   : > { %p10_p4 = scmp.ge.s32.totalorder %s13_s12, 4  }
  0xe9   :  { %12 = sbr.rel (!%p10_p4) target bundleno = 1 (0x1), region = 62 }

// kernel: vit_forward.3
= control target key start
LH: loop header
LB: loop body
LE: loop exit
PB: predicated region body
PF: predicated region fallthrough
CT: control target
= control target key end

     0   :  { %s2759_s0 = inlined_call_operand.vmem [shape: f32[2,24,32], index: 0, kind: input, shape index: {}]   ;;  %s2760_s1 = inlined_call_operand.vmem [shape: f32[1,32], index: 1, kind: input, shape index: {}]   ;;  %s2761_s2 = inlined_call_operand.vmem [shape: f32[1,32], index: 2, kind: input, shape index: {}]   ;;  %s2762_s3 = inlined_call_operand.vmem [shape: bf16[32,96], index: 3, kind: input, shape index: {}]   ;;  %s2763_s4 = inlined_call_operand.vmem [shape: f32[1,96], index: 4, kind: input, shape index: {}]   ;;  %s2764_s5 = inlined_call_operand.vmem [shape: bf16[32,64], index: 5, kind: input, shape index: {}]   ;;  %s2765_s6 = inlined_call_operand.vmem [shape: f32[1,64], index: 6, kind: input, shape index: {}]   ;;  %s2766_s7 = inlined_call_operand.vmem [shape: bf16[64,32], index: 7, kind: input, shape index: {}]   ;;  %s2767_s8 = inlined_call_operand.vmem [shape: f32[1,32], index: 8, kind: input, shape index: {}]   ;;  %s2768_s9 = inlined_call_operand.vmem [shape: f32[1,32], index: 9, kind: input, shape index: {}]   ;;  %s2769_s10 = inlined_call_operand.vmem [shape: f32[1,32], index: 10, kind: input, shape index: {}]   ;;  %s2770_s11 = inlined_call_operand.vmem [shape: bf16[32,128], index: 11, kind: input, shape index: {}]   ;;  %s2771_s12 = inlined_call_operand.vmem [shape: f32[1,128], index: 12, kind: input, shape index: {}]   ;;  %s2772_s13 = inlined_call_operand.hbm [shape: f32[2,1,128], index: 13, kind: output, shape index: {}]  }
   0x1   :  { %2779 = sst [smem:[#allocation11_spill]] %s2759_s0 }
   0x2   :  { %2780 = sst [smem:[#allocation12_spill]] %s2760_s1 }
   0x3   :  { %18 = vsyncpa [#allocation4], 0 }
   0x4   :  { %20 = vsyncpa [#allocation4 + $0x1], 0  ;;  %s2356_s25 = smov 0   ;;  %s2358_s26 = smov 0  }
   0x5   :  { %s2360_s27 = smov 0   ;;  %s2362_s28 = smov 0  }
   0x6   :  { %s2364_s29 = smov 0   ;;  %s2366_s30 = smov 0  }
   0x7   :  { %s2368_s14 = smov 0   ;;  %s2370_s15 = smov 0  }
   0x8 LB: > { %2781 = sst [smem:[#allocation6_spill]] %s2238_s25  ;;  %s1791_s16 = sadd.s32 4294967295, %s2266_s15   ;;  %s2266_s15 = sphi %s2370_s15, %s26_s15   ;;  %s2262_s14 = sphi %s2368_s14, %s2800_s14   ;;  %s2258_s30 = sphi %s2366_s30, %s2795_s30   ;;  %s2254_s29 = sphi %s2364_s29, %s2799_s29   ;;  %s2250_s28 = sphi %s2362_s28, %s2794_s28   ;;  %s2246_s27 = sphi %s2360_s27, %s2798_s27   ;;  %s2242_s26 = sphi %s2358_s26, %s2797_s26   ;;  %s2238_s25 = sphi %s2356_s25, %s2796_s25  }
   0x9   : > { %2782 = sst [smem:[#allocation7_spill]] %s2258_s30  ;;  %s1792_s17 = sadd.s32 4294967294, %s2266_s15  }
   0xa   : > { %2783 = sst [smem:[#allocation8_spill]] %s2266_s15  ;;  %s35_s18 = sadd.s32 1, %s2258_s30 }
   0xb   : > { %p36_p0 = scmp.ge.s32.totalorder %s35_s18, 2  ;;  %s38_s19 = sadd.s32 1, %s2262_s14 }
   0xc   : > { %p333_p1 = scmp.ne.s32.totalorder %s2246_s27, %s2242_s26  ;;  %p334_p2 = scmp.eq.s32.totalorder %s1791_s16, 3 }
   0xd   : > { %s2802_s18 = smov (%p36_p0, %s35_s18), 0  ;;  %s2804_s19 = smov (!%p36_p0, %s38_s19), %s2262_s14 }
   0xe   : > { %2784 = sst [smem:[#allocation9_spill]] %s2802_s18  ;;  %p2405_p3 = por %p334_p2, %p333_p1 }
   0xf   : > { %p339_p4 = scmp.ne.s32.totalorder %s2242_s26, %s2238_s25  ;;  %p40_p5 = scmp.ge.s32.totalorder %s2804_s19, 2 }
  0x10   : > { %p340_p6 = scmp.eq.s32.totalorder %s1792_s17, 3  ;;  %p1795_p7 = scmp.ge.s32.totalorder %s2266_s15, 1 }
  0x11   : > { %p402_p8 = scmp.lt.s32.totalorder %s2266_s15, 5  ;;  %s2806_s19 = smov (%p40_p5, %s2804_s19), 0 }
  0x12   : > { %p2415_p9 = por %p340_p6, %p339_p4  ;;  %s320_s22 = ssub.s32 %s2262_s14, %s2806_s19 }
  0x13   : > { %p403_p10 = pnand %p1795_p7, %p402_p8  ;;  %s323_s23 = sadd.s32 1, %s2246_s27 }
  0x14   : > { %s2786_s21 = scalar_select %p2415_p9, 1, 0 }
  0x15   : > { %p321_p11 = scmp.eq.s32.totalorder %s320_s22, 0  ;;  %406 = sbr.rel (%p403_p10) target bundleno = 4429 (0x114d), region = 72 }
  0x16   : > { %2787 = sst [smem:[#allocation10_spill]] %s2786_s21  ;;  %s2778_s16 = sand.u32 (!%p403_p10), 1, %s2242_s26  }
  0x17   : > { %s2423_s24 = scalar_select %p321_p11, %s2246_s27, %s323_s23  }
  0x18   : > { %p445_p12 = scmp.lt.s32.totalorder (!%p403_p10), %s2254_s29, 1  ;;  %s2788_s0 = sld [smem:[#allocation11_spill]] (!%p403_p10) }
  0x19   : > { %s2433_s21 = scalar_lea.vmem (!%p403_p10), [#allocation3], %s2778_s16  ;;  %p1797_p13 = scmp.ne.s32.totalorder (!%p403_p10), %s2250_s28, 0 }
  0x1a   : > { %s446_s17 = scalar_select %p445_p12, %s2254_s29, 1 }
  0x1b   : > { %454 = sbr.rel (%p1797_p13) target bundleno = 35 (0x23), region = 76 }
  0x1c   : > { %s2001_s18 = smul.u32 24, %s446_s17 }
  0x1e   : > { %s449_s15 = scalar_lea.vmem %s2788_s0, %s2001_s18 }
  0x20   : > { %v455_v0 = vld [vmem:[%s449_s15] sm:$0xff]  ;;  %vm458_vm0 = vcmask 261120   ;;  %v456_v1 = vld [vmem:[%s449_s15 + $0x8] sm:$0xff]  ;;  %v457_v2 = vld [vmem:[%s449_s15 + $0x10] sm:$0xff] }
  0x21   : > { %459 = vst.msk [vmem:[#allocation2] sm:$0xff] %vm458_vm0, %v455_v0  ;;  %460 = vst.msk [vmem:[#allocation2 + $0x8] sm:$0xff] %vm458_vm0, %v456_v1 }
  0x22   : > { %461 = vst.msk [vmem:[#allocation2 + $0x10] sm:$0xff] %vm458_vm0, %v457_v2 }
  0x23 PF: > { %vm467_vm1 = vcmask 261120   ;;  %v2090_v24 = vld [vmem:[%s2762_s3 + $0x8] sm:$0xff]   ;;  %v2091_v25 = vld [vmem:[%s2762_s3] sm:$0xff]   ;;  %s2789_s1 = sld [smem:[#allocation12_spill]]  ;;  %s2268_s18 = smov 96   ;;  %vm617_vm2 = vcmask 64512   ;;  %v607_v1 = vlaneseq }
  0x24   : > { %1889 = vmatprep.subr.bf16.mxu1 %v2090_v24  ;;  %v2469_v43 = vld [vmem:[%s2761_s2] ss:$0 sm:$0xff]  ;;  %vm678_vm4 = vcmask 195584   ;;  %s2270_s22 = smov 64   ;;  %s2271_s23 = smov 120   ;;  %vm725_vm5 = vcmask 1043456  }
  0x25   : > { %1890 = vmatpush3.bf16.msra.mxu1 %v2090_v24  ;;  %v1800_v51 = vld [vmem:[%s2763_s4] ss:$0 sm:$0xff]  ;;  %v608_v2 = vand.u32 127, %v607_v1  ;;  %s2272_s17 = smov 88   ;;  %s2273_s25 = smov 56   ;;  %vm1311_vm6 = vcmask 130048  }
  0x26   : > { %1891 = vmatprep.subr.bf16.mxu1 %v2091_v25  ;;  %s2274_s30 = smov 80   ;;  %s2275_s15 = smov 112   ;;  %vm1567_vm10 = vcmask 523264  }
  0x27   : > { %vm609_vm3 = vcmp.lt.s32.totalorder %v608_v2, 17  ;;  %p1833_p0 = scmp.ne.s32.totalorder %s2250_s28, 1 }
  0x28   : > { %v2436_v3 = vld [vmem:[#allocation2] sm:$0xff]  ;;  %v2440_v5 = vld [vmem:[#allocation2 + $0x8] sm:$0xff] }
  0x29   : > { %v2438_v4 = vld [vmem:[#allocation2 + $0x10] sm:$0xff]  ;;  %v468_v6 = vsel %vm467_vm1, %v2436_v3, 0.0  ;;  %v471_v8 = vsel %vm467_vm1, %v2440_v5, 0.0  ;;  %1892 = vmatpush3.bf16.msra.mxu1 %v2091_v25  ;;  %v2463_v37 = vld [vmem:[%s2789_s1] ss:$0 sm:$0xff] }
  0x2a   : > { %v474_v7 = vsel %vm467_vm1, %v2438_v4, 0.0  ;;  %469 = vadd.xlane.f32.xlu0 %v468_v6 }
  0x2b   : > { %475 = vadd.xlane.f32.xlu1 %v474_v7  ;;  %v2269_v7 = vmov -1e+30  }
  0x2e   : > { %472 = vadd.xlane.f32.xlu0 %v471_v8  ;;  %v2495_v8 = vsel %vm609_vm3, 0.0, %v2269_v7 }
  0xb3   : > { %v470_v9 = vpop.xlane.xlu0 %469 }
  0xb4   : > { %v476_v10 = vpop.xlane.xlu1 %475  ;;  %v478_v11 = vmul.f32 0.03125, %v470_v9 }
  0xb5   : > { %v480_v12 = vmul.f32 0.03125, %v476_v10 }
  0xb6   : > { %v481_v13 = vsub.f32 %v2436_v3, %v478_v11 }
  0xb7   : > { %v483_v14 = vsub.f32 %v2438_v4, %v480_v12  ;;  %v473_v15 = vpop.xlane.xlu0 %472 }
  0xb8   : > { %v479_v16 = vmul.f32 0.03125, %v473_v15  ;;  %v484_v17 = vmul.f32 %v481_v13, %v481_v13 }
  0xb9   : > { %v486_v18 = vmul.f32 %v483_v14, %v483_v14 }
  0xba   : > { %v482_v19 = vsub.f32 %v2440_v5, %v479_v16  ;;  %v487_v20 = vsel %vm467_vm1, %v484_v17, 0.0 }
  0xbb   : > { %488 = vadd.xlane.f32.xlu1 %v487_v20  ;;  %v493_v21 = vsel %vm467_vm1, %v486_v18, 0.0 }
  0xbc   : > { %v485_v22 = vmul.f32 %v482_v19, %v482_v19 }
  0xbe   : > { %v490_v23 = vsel %vm467_vm1, %v485_v22, 0.0 }
  0xbf   : > { %494 = vadd.xlane.f32.xlu1 %v493_v21  ;;  %491 = vadd.xlane.f32.xlu0 %v490_v23 }
 0x144   : > { %v489_v26 = vpop.xlane.xlu1 %488 }
 0x145   : > { %v496_v27 = vmul.f32 0.03125, %v489_v26 }
 0x147   : > { %v499_v28 = vadd.f32 1e-05, %v496_v27 }
 0x148   : > { %v495_v29 = vpop.xlane.xlu1 %494  ;;  %v492_v30 = vpop.xlane.xlu0 %491 }
 0x149   : > { %2098 = vrsqrt.f32 %v499_v28  ;;  %v498_v31 = vmul.f32 0.03125, %v495_v29  ;;  %v497_v32 = vmul.f32 0.03125, %v492_v30 }
 0x14b   : > { %v501_v33 = vadd.f32 1e-05, %v498_v31  ;;  %v500_v34 = vadd.f32 1e-05, %v497_v32 }
 0x14d   : > { %2100 = vrsqrt.f32 %v501_v33 }
 0x14e   : > { %2102 = vrsqrt.f32 %v500_v34 }
 0x156   : > { %v2099_v35 = vpop.eup %2098 }
 0x157   : > { %v505_v36 = vmul.f32 %v2099_v35, %v481_v13 }
 0x159   : > { %v514_v42 = vmul.f32 %v2463_v37, %v505_v36 }
 0x15a   : > { %v2101_v38 = vpop.eup %2100 }
 0x15b   : > { %v2103_v39 = vpop.eup %2102  ;;  %v507_v40 = vmul.f32 %v2101_v38, %v483_v14  ;;  %v523_v47 = vadd.f32 %v2469_v43, %v514_v42 }
 0x15c   : > { %v506_v41 = vmul.f32 %v2103_v39, %v482_v19 }
 0x15d   : > { %v516_v44 = vmul.f32 %v2463_v37, %v507_v40 }
 0x15e   : > { %v515_v45 = vmul.f32 %v2463_v37, %v506_v41 }
 0x15f   : > { %v525_v46 = vadd.f32 %v2469_v43, %v516_v44 }
 0x160   : > { %v524_v48 = vadd.f32 %v2469_v43, %v515_v45 }
 0x161   : > { %v527_v49 = vpack.c.bf16 %v525_v46, %v525_v46 }
 0x162   : > { %v526_v50 = vpack.c.bf16 %v524_v48, %v523_v47 }
 0x164   : > { %1893 = vmatprep.mubr.msk.bf16.mxu1 %vm467_vm1, %v526_v50 }
 0x165   : > { %1894 = vmatmul.mubr.msk.bf16.vlgmr.msra.gmra.mxu1 %vm467_vm1, %v527_v49 }
 0x225   : > { %v1895_v52 = vpop.f32.mrf.mxu1 }
 0x226   : > { %v600_v53 = vadd.f32 %v1895_v52, %v1800_v51 }
 0x227   : > { %v591_v54 = vpop.f32.mrf.mxu1 }
 0x228   : > { %v2481_v55 = vpack.c.bf16 %v600_v53, %v600_v53  ;;  %v592_v58 = vadd.f32 %v1800_v51, %v591_v54 }
 0x229   : > { %v1896_v56 = vpop.f32.mrf.mxu1 }
 0x22a   : > { %615 = vrot.lane.b32.xlu0 %v2481_v55, %s2268_s18 }
 0x22b   : > { %v594_v57 = vpop.f32.mrf.mxu1 }
 0x22c   : > { %v595_v59 = vadd.f32 %v1800_v51, %v594_v57 }
 0x22e   : > { %v2484_v60 = vpack.c.bf16 %v595_v59, %v592_v58 }
 0x230   : > { %613 = vrot.lane.b32.xlu1 %v2484_v60, %s2268_s18  ;;  %1901 = vmatprep.mubr.msk.bf16.mxu1 %vm617_vm2, %v2484_v60  ;;  %s2276_s18 = smov 48  }
 0x29c   : > { %v616_v61 = vpop.permute.xlu0 %615 }
 0x29d   : > { %v628_v62 = vsel %vm617_vm2, %v616_v61, 0  ;;  %1989 = vmatprep.subr.msk.bf16.mxu1 %vm617_vm2, %v616_v61 }
 0x29e   : > { %1898 = vmatpush3.bf16.xpose.msra.mxu1 %v628_v62 }
 0x2a2   : > { %v614_v63 = vpop.permute.xlu1 %613 }
 0x2a3   : > { %1990 = vmatprep.subr.msk.bf16.mxu1 %vm617_vm2, %v614_v63  ;;  %v625_v0 = vsel %vm617_vm2, %v614_v63, 0 }
 0x2a6   : > { %1900 = vmatpush3.bf16.xpose.msra.mxu1 %v625_v0 }
 0x2ad   : > { %1902 = vmatmul.mubr.msk.bf16.vlgmr.msra.gmra.mxu1 %vm617_vm2, %v2481_v55 }
 0x36d   : > { %v1903_v6 = vpop.f32.mrf.mxu1 }
 0x36e   : > { %v673_v15 = vadd.f32 %v1903_v6, %v2495_v8 }
 0x36f   : > { %v664_v9 = vpop.f32.mrf.mxu1 }
 0x370   : > { %v665_v10 = vadd.f32 %v664_v9, %v2495_v8  ;;  %v685_v17 = vsel %vm678_vm4, %v673_v15, -inf }
 0x371   : > { %v1904_v11 = vpop.f32.mrf.mxu1 }
 0x372   : > { %v679_v12 = vsel %vm678_vm4, %v665_v10, -inf }
 0x373   : > { %v667_v13 = vpop.f32.mrf.mxu1  ;;  %680 = vmax.xlane.f32.xlu1 %v679_v12 }
 0x374   : > { %v668_v14 = vadd.f32 %v667_v13, %v2495_v8 }
 0x376   : > { %v682_v16 = vsel %vm678_vm4, %v668_v14, -inf }
 0x377   : > { %683 = vmax.xlane.f32.xlu0 %v682_v16 }
 0x37b   : > { %686 = vmax.xlane.f32.xlu0 %v685_v17 }
 0x3fc   : > { %v681_v18 = vpop.xlane.xlu1 %680 }
 0x3fd   : > { %v688_v21 = vsub.f32 %v665_v10, %v681_v18 }
 0x3ff   : > { %v691_v25 = vmul.f32 1.442695, %v688_v21 }
 0x400   : > { %v684_v19 = vpop.xlane.xlu0 %683 }
 0x401   : > { %v689_v20 = vsub.f32 %v668_v14, %v684_v19 }
 0x403   : > { %v693_v22 = vmul.f32 1.442695, %v689_v20 }
 0x404   : > { %v687_v23 = vpop.xlane.xlu0 %686 }
 0x405   : > { %2104 = vpow2.f32 %v693_v22  ;;  %v690_v24 = vsub.f32 %v673_v15, %v687_v23 }
 0x407   : > { %v695_v26 = vmul.f32 1.442695, %v690_v24 }
 0x409   : > { %2106 = vpow2.f32 %v695_v26 }
 0x40a   : > { %2108 = vpow2.f32 %v691_v25 }
 0x412   : > { %v2105_v27 = vpop.eup %2104 }
 0x413   : > { %v700_v28 = vsel %vm678_vm4, %v2105_v27, 0.0 }
 0x414   : > { %701 = vadd.xlane.f32.xlu0 %v700_v28 }
 0x416   : > { %v2107_v29 = vpop.eup %2106 }
 0x417   : > { %v703_v30 = vsel %vm678_vm4, %v2107_v29, 0.0  ;;  %v2109_v31 = vpop.eup %2108 }
 0x418   : > { %704 = vadd.xlane.f32.xlu1 %v703_v30  ;;  %v697_v32 = vsel %vm678_vm4, %v2109_v31, 0.0 }
 0x41c   : > { %698 = vadd.xlane.f32.xlu1 %v697_v32 }
 0x42a   : > { %716 = vrot.lane.b32.xlu0 %v2481_v55, %s2270_s22 }
 0x42d   : > { %714 = vrot.lane.b32.xlu1 %v2484_v60, %s2270_s22  ;;  %s2277_s22 = smov 72  }
 0x42e   : > { %777 = vrot.lane.b32.xlu0 %v2484_v60, %s2271_s23 }
 0x431   : > { %783 = vrot.lane.b32.xlu1 %v2481_v55, %s2272_s17 }
 0x435   : > { %781 = vrot.lane.b32.xlu1 %v2484_v60, %s2272_s17  ;;  %s2279_s17 = smov 40  }
 0x439   : > { %779 = vrot.lane.b32.xlu1 %v2481_v55, %s2271_s23  ;;  %s2278_s23 = smov 104  }
 0x49d   : > { %v702_v33 = vpop.xlane.xlu0 %701 }
 0x4a1   : > { %v717_v34 = vpop.permute.xlu0 %716  ;;  %v705_v35 = vpop.xlane.xlu1 %704 }
 0x4a2   : > { %1991 = vmatprep.subr.msk.bf16.mxu0 %vm725_vm5, %v717_v34  ;;  %v727_v36 = vsel %vm725_vm5, %v717_v34, 0  ;;  %2110 = vrcp.f32 %v705_v35 }
 0x4a3   : > { %1906 = vmatpush3.bf16.msra.mxu0 %v727_v36  ;;  %2112 = vrcp.f32 %v702_v33 }
 0x4a5   : > { %v699_v38 = vpop.xlane.xlu1 %698  ;;  %v778_v50 = vpop.permute.xlu0 %777 }
 0x4a6   : > { %2114 = vrcp.f32 %v699_v38 }
 0x4a9   : > { %v715_v39 = vpop.permute.xlu1 %714 }
 0x4aa   : > { %1907 = vmatprep.subr.bf16.mxu0 %v715_v39 }
 0x4ab   : > { %1908 = vmatpush3.bf16.msra.mxu0 %v715_v39 }
 0x4ad   : > { %v784_v40 = vpop.permute.xlu1 %783 }
 0x4ae   : > { %1992 = vmatprep.subr.msk.bf16.mxu0 %vm617_vm2, %v784_v40  ;;  %v795_v51 = vsel %vm617_vm2, %v784_v40, 0 }
 0x4af   : > { %v2111_v41 = vpop.eup %2110 }
 0x4b0   : > { %v2113_v42 = vpop.eup %2112  ;;  %v711_v45 = vmul.f32 %v2111_v41, %v2107_v29 }
 0x4b1   : > { %v710_v47 = vmul.f32 %v2113_v42, %v2105_v27  ;;  %v782_v52 = vpop.permute.xlu1 %781 }
 0x4b2   : > { %v713_v49 = vpack.c.bf16 %v711_v45, %v711_v45  ;;  %v792_v53 = vsel %vm617_vm2, %v782_v52, 0 }
 0x4b3   : > { %v2115_v44 = vpop.eup %2114 }
 0x4b4   : > { %v709_v46 = vmul.f32 %v2115_v44, %v2109_v31 }
 0x4b5   : > { %v780_v54 = vpop.permute.xlu1 %779 }
 0x4b6   : > { %v712_v48 = vpack.c.bf16 %v710_v47, %v709_v46 }
 0x4b8   : > { %1909 = vmatprep.mubr.msk.bf16.mxu0 %vm678_vm4, %v712_v48 }
 0x4b9   : > { %1910 = vmatmul.mubr.msk.bf16.vlgmr.msra.gmra.mxu0 %vm678_vm4, %v713_v49 }
 0x4ba   : > { %1914 = vmatpush3.bf16.xpose.msra.mxu0 %v795_v51  ;;  %1917 = vmatprep.mubr.msk.bf16.mxu0 %vm617_vm2, %v778_v50 }
 0x4bb   : > { %1993 = vmatprep.subr.msk.bf16.mxu0 %vm617_vm2, %v782_v52 }
 0x4c2   : > { %1916 = vmatpush3.bf16.xpose.msra.mxu0 %v792_v53 }
 0x4c9   : > { %1918 = vmatmul.mubr.msk.bf16.vlgmr.msra.gmra.mxu0 %vm617_vm2, %v780_v54 }
 0x579   : > { %v2522_v56 = vpop.f32.mrf.mxu0 }
 0x57b   : > { %v2524_v57 = vpop.f32.mrf.mxu0 }
 0x57d   : > { %v1912_v58 = vpop.f32.mrf.mxu0 }
 0x57f   : > { %v2526_v59 = vpop.f32.mrf.mxu0 }
 0x589   : > { %v1919_v61 = vpop.f32.mrf.mxu0 }
 0x58a   : > { %v840_v1 = vadd.f32 %v1919_v61, %v2495_v8 }
 0x58b   : > { %v831_v62 = vpop.f32.mrf.mxu0 }
 0x58c   : > { %v832_v63 = vadd.f32 %v831_v62, %v2495_v8  ;;  %v851_v10 = vsel %vm678_vm4, %v840_v1, -inf }
 0x58d   : > { %v1920_v0 = vpop.f32.mrf.mxu0 }
 0x58e   : > { %v845_v2 = vsel %vm678_vm4, %v832_v63, -inf }
 0x58f   : > { %v834_v6 = vpop.f32.mrf.mxu0  ;;  %846 = vmax.xlane.f32.xlu0 %v845_v2 }
 0x590   : > { %v835_v7 = vadd.f32 %v834_v6, %v2495_v8 }
 0x592   : > { %v848_v9 = vsel %vm678_vm4, %v835_v7, -inf }
 0x593   : > { %849 = vmax.xlane.f32.xlu1 %v848_v9  ;;  %852 = vmax.xlane.f32.xlu0 %v851_v10 }
 0x618   : > { %v847_v11 = vpop.xlane.xlu0 %846 }
 0x619   : > { %v854_v12 = vsub.f32 %v832_v63, %v847_v11 }
 0x61b   : > { %v857_v13 = vmul.f32 1.442695, %v854_v12 }
 0x61c   : > { %v850_v14 = vpop.xlane.xlu1 %849  ;;  %v853_v15 = vpop.xlane.xlu0 %852 }
 0x61d   : > { %2116 = vpow2.f32 %v857_v13  ;;  %v855_v16 = vsub.f32 %v835_v7, %v850_v14  ;;  %v856_v17 = vsub.f32 %v840_v1, %v853_v15 }
 0x61f   : > { %v859_v18 = vmul.f32 1.442695, %v855_v16  ;;  %v861_v19 = vmul.f32 1.442695, %v856_v17 }
 0x621   : > { %2118 = vpow2.f32 %v859_v18 }
 0x622   : > { %2120 = vpow2.f32 %v861_v19 }
 0x62a   : > { %v2117_v20 = vpop.eup %2116 }
 0x62b   : > { %v863_v21 = vsel %vm678_vm4, %v2117_v20, 0.0 }
 0x62c   : > { %864 = vadd.xlane.f32.xlu0 %v863_v21 }
 0x62e   : > { %v2119_v22 = vpop.eup %2118 }
 0x62f   : > { %v2121_v23 = vpop.eup %2120  ;;  %v866_v24 = vsel %vm678_vm4, %v2119_v22, 0.0 }
 0x630   : > { %867 = vadd.xlane.f32.xlu0 %v866_v24  ;;  %v869_v25 = vsel %vm678_vm4, %v2121_v23, 0.0 }
 0x631   : > { %870 = vadd.xlane.f32.xlu1 %v869_v25 }
 0x642   : > { %880 = vrot.lane.b32.xlu1 %v2484_v60, %s2273_s25 }
 0x646   : > { %948 = vrot.lane.b32.xlu1 %v2481_v55, %s2274_s30  ;;  %882 = vrot.lane.b32.xlu0 %v2481_v55, %s2273_s25  ;;  %s2280_s25 = smov 8  }
 0x64a   : > { %946 = vrot.lane.b32.xlu1 %v2484_v60, %s2274_s30  ;;  %942 = vrot.lane.b32.xlu0 %v2484_v60, %s2275_s15  ;;  %s2281_s30 = smov 16  }
 0x64e   : > { %944 = vrot.lane.b32.xlu1 %v2481_v55, %s2275_s15  ;;  %s2282_s15 = smov 24  }
 0x6b5   : > { %v865_v26 = vpop.xlane.xlu0 %864 }
 0x6b6   : > { %2122 = vrcp.f32 %v865_v26 }
 0x6b9   : > { %v868_v27 = vpop.xlane.xlu0 %867 }
 0x6ba   : > { %v871_v28 = vpop.xlane.xlu1 %870  ;;  %2124 = vrcp.f32 %v868_v27 }
 0x6bb   : > { %2126 = vrcp.f32 %v871_v28 }
 0x6bd   : > { %v883_v29 = vpop.permute.xlu0 %882 }
 0x6be   : > { %v881_v30 = vpop.permute.xlu1 %880  ;;  %v892_v31 = vsel %vm725_vm5, %v883_v29, 0  ;;  %1994 = vmatprep.subr.msk.bf16.mxu1 %vm725_vm5, %v883_v29 }
 0x6bf   : > { %1922 = vmatpush3.bf16.msra.mxu1 %v892_v31 }
 0x6c0   : > { %1923 = vmatprep.subr.bf16.mxu1 %v881_v30 }
 0x6c1   : > { %v943_v44 = vpop.permute.xlu0 %942 }
 0x6c2   : > { %v949_v32 = vpop.permute.xlu1 %948 }
 0x6c3   : > { %1924 = vmatpush3.bf16.msra.mxu1 %v881_v30  ;;  %v2123_v33 = vpop.eup %2122  ;;  %v960_v42 = vsel %vm617_vm2, %v949_v32, 0 }
 0x6c4   : > { %1995 = vmatprep.subr.msk.bf16.mxu1 %vm617_vm2, %v949_v32  ;;  %v875_v36 = vmul.f32 %v2123_v33, %v2117_v20 }
 0x6c6   : > { %v947_v45 = vpop.permute.xlu1 %946 }
 0x6c7   : > { %v2125_v34 = vpop.eup %2124  ;;  %v957_v46 = vsel %vm617_vm2, %v947_v45, 0 }
 0x6c8   : > { %v2127_v35 = vpop.eup %2126  ;;  %v876_v38 = vmul.f32 %v2125_v34, %v2119_v22 }
 0x6c9   : > { %v877_v39 = vmul.f32 %v2127_v35, %v2121_v23 }
 0x6ca   : > { %v878_v40 = vpack.c.bf16 %v876_v38, %v875_v36  ;;  %v945_v47 = vpop.permute.xlu1 %944 }
 0x6cb   : > { %v879_v41 = vpack.c.bf16 %v877_v39, %v877_v39 }
 0x6cc   : > { %1925 = vmatprep.mubr.msk.bf16.mxu1 %vm678_vm4, %v878_v40 }
 0x6cd   : > { %1926 = vmatmul.mubr.msk.bf16.vlgmr.msra.gmra.mxu1 %vm678_vm4, %v879_v41 }
 0x6ce   : > { %1930 = vmatpush3.bf16.xpose.msra.mxu1 %v960_v42  ;;  %1933 = vmatprep.mubr.msk.bf16.mxu1 %vm617_vm2, %v943_v44 }
 0x6cf   : > { %1996 = vmatprep.subr.msk.bf16.mxu1 %vm617_vm2, %v947_v45 }
 0x6d6   : > { %1932 = vmatpush3.bf16.xpose.msra.mxu1 %v957_v46 }
 0x6dd   : > { %1934 = vmatmul.mubr.msk.bf16.vlgmr.msra.gmra.mxu1 %vm617_vm2, %v945_v47 }
 0x78d   : > { %v2553_v48 = vpop.f32.mrf.mxu1 }
 0x78f   : > { %v2555_v49 = vpop.f32.mrf.mxu1 }
 0x791   : > { %v1928_v50 = vpop.f32.mrf.mxu1 }
 0x793   : > { %v2557_v51 = vpop.f32.mrf.mxu1 }
 0x79d   : > { %v1935_v52 = vpop.f32.mrf.mxu1 }
 0x79e   : > { %v1005_v61 = vadd.f32 %v1935_v52, %v2495_v8 }
 0x79f   : > { %v996_v53 = vpop.f32.mrf.mxu1 }
 0x7a0   : > { %v997_v54 = vadd.f32 %v996_v53, %v2495_v8  ;;  %v1016_v2 = vsel %vm678_vm4, %v1005_v61, -inf }
 0x7a1   : > { %v1936_v58 = vpop.f32.mrf.mxu1 }
 0x7a2   : > { %v1010_v62 = vsel %vm678_vm4, %v997_v54, -inf }
 0x7a3   : > { %v999_v63 = vpop.f32.mrf.mxu1  ;;  %1011 = vmax.xlane.f32.xlu0 %v1010_v62 }
 0x7a4   : > { %v1000_v0 = vadd.f32 %v999_v63, %v2495_v8 }
 0x7a6   : > { %v1013_v1 = vsel %vm678_vm4, %v1000_v0, -inf }
 0x7a7   : > { %1014 = vmax.xlane.f32.xlu1 %v1013_v1  ;;  %1017 = vmax.xlane.f32.xlu0 %v1016_v2 }
 0x82c   : > { %v1012_v6 = vpop.xlane.xlu0 %1011 }
 0x82d   : > { %v1019_v7 = vsub.f32 %v997_v54, %v1012_v6 }
 0x82f   : > { %v1022_v9 = vmul.f32 1.442695, %v1019_v7 }
 0x830   : > { %v1015_v10 = vpop.xlane.xlu1 %1014  ;;  %v1018_v11 = vpop.xlane.xlu0 %1017 }
 0x831   : > { %2128 = vpow2.f32 %v1022_v9  ;;  %v1020_v12 = vsub.f32 %v1000_v0, %v1015_v10  ;;  %v1021_v13 = vsub.f32 %v1005_v61, %v1018_v11 }
 0x833   : > { %v1024_v14 = vmul.f32 1.442695, %v1020_v12  ;;  %v1026_v15 = vmul.f32 1.442695, %v1021_v13 }
 0x835   : > { %2130 = vpow2.f32 %v1024_v14 }
 0x836   : > { %2132 = vpow2.f32 %v1026_v15 }
 0x83e   : > { %v2129_v16 = vpop.eup %2128 }
 0x83f   : > { %v1028_v17 = vsel %vm678_vm4, %v2129_v16, 0.0 }
 0x840   : > { %1029 = vadd.xlane.f32.xlu0 %v1028_v17 }
 0x842   : > { %v2131_v18 = vpop.eup %2130 }
 0x843   : > { %v2133_v19 = vpop.eup %2132  ;;  %v1031_v20 = vsel %vm678_vm4, %v2131_v18, 0.0 }
 0x844   : > { %1032 = vadd.xlane.f32.xlu0 %v1031_v20  ;;  %v1034_v21 = vsel %vm678_vm4, %v2133_v19, 0.0 }
 0x845   : > { %1035 = vadd.xlane.f32.xlu1 %v1034_v21 }
 0x856   : > { %1045 = vrot.lane.b32.xlu1 %v2484_v60, %s2276_s18 }
 0x85a   : > { %1113 = vrot.lane.b32.xlu1 %v2481_v55, %s2277_s22  ;;  %1047 = vrot.lane.b32.xlu0 %v2481_v55, %s2276_s18 }
 0x85e   : > { %1111 = vrot.lane.b32.xlu1 %v2484_v60, %s2277_s22  ;;  %1107 = vrot.lane.b32.xlu0 %v2484_v60, %s2278_s23 }
 0x862   : > { %1109 = vrot.lane.b32.xlu1 %v2481_v55, %s2278_s23 }
 0x8c9   : > { %v1030_v22 = vpop.xlane.xlu0 %1029 }
 0x8ca   : > { %2134 = vrcp.f32 %v1030_v22 }
 0x8cd   : > { %v1033_v23 = vpop.xlane.xlu0 %1032 }
 0x8ce   : > { %v1036_v24 = vpop.xlane.xlu1 %1035  ;;  %2136 = vrcp.f32 %v1033_v23 }
 0x8cf   : > { %2138 = vrcp.f32 %v1036_v24 }
 0x8d1   : > { %v1048_v25 = vpop.permute.xlu0 %1047 }
 0x8d2   : > { %v1046_v26 = vpop.permute.xlu1 %1045  ;;  %v1057_v27 = vsel %vm725_vm5, %v1048_v25, 0  ;;  %1997 = vmatprep.subr.msk.bf16.mxu0 %vm725_vm5, %v1048_v25 }
 0x8d3   : > { %1938 = vmatpush3.bf16.msra.mxu0 %v1057_v27 }
 0x8d4   : > { %1939 = vmatprep.subr.bf16.mxu0 %v1046_v26 }
 0x8d5   : > { %v1108_v39 = vpop.permute.xlu0 %1107 }
 0x8d6   : > { %v1114_v28 = vpop.permute.xlu1 %1113 }
 0x8d7   : > { %1940 = vmatpush3.bf16.msra.mxu0 %v1046_v26  ;;  %v2135_v29 = vpop.eup %2134  ;;  %v1125_v38 = vsel %vm617_vm2, %v1114_v28, 0 }
 0x8d8   : > { %1998 = vmatprep.subr.msk.bf16.mxu0 %vm617_vm2, %v1114_v28  ;;  %v1040_v32 = vmul.f32 %v2135_v29, %v2129_v16 }
 0x8da   : > { %v1112_v40 = vpop.permute.xlu1 %1111 }
 0x8db   : > { %v2137_v30 = vpop.eup %2136  ;;  %v1122_v41 = vsel %vm617_vm2, %v1112_v40, 0 }
 0x8dc   : > { %v2139_v31 = vpop.eup %2138  ;;  %v1041_v33 = vmul.f32 %v2137_v30, %v2131_v18 }
 0x8dd   : > { %v1042_v34 = vmul.f32 %v2139_v31, %v2133_v19 }
 0x8de   : > { %v1043_v35 = vpack.c.bf16 %v1041_v33, %v1040_v32  ;;  %v1110_v42 = vpop.permute.xlu1 %1109 }
 0x8df   : > { %v1044_v36 = vpack.c.bf16 %v1042_v34, %v1042_v34 }
 0x8e0   : > { %1941 = vmatprep.mubr.msk.bf16.mxu0 %vm678_vm4, %v1043_v35 }
 0x8e1   : > { %1942 = vmatmul.mubr.msk.bf16.vlgmr.msra.gmra.mxu0 %vm678_vm4, %v1044_v36 }
 0x8e2   : > { %1946 = vmatpush3.bf16.xpose.msra.mxu0 %v1125_v38  ;;  %1949 = vmatprep.mubr.msk.bf16.mxu0 %vm617_vm2, %v1108_v39 }
 0x8e3   : > { %1999 = vmatprep.subr.msk.bf16.mxu0 %vm617_vm2, %v1112_v40 }
 0x8ea   : > { %1948 = vmatpush3.bf16.xpose.msra.mxu0 %v1122_v41 }
 0x8f1   : > { %1950 = vmatmul.mubr.msk.bf16.vlgmr.msra.gmra.mxu0 %vm617_vm2, %v1110_v42 }
 0x9a1   : > { %v1943_v44 = vpop.f32.mrf.mxu0 }
 0x9a3   : > { %v1093_v45 = vpop.f32.mrf.mxu0 }
 0x9a5   : > { %v1944_v46 = vpop.f32.mrf.mxu0 }
 0x9a7   : > { %v1096_v47 = vpop.f32.mrf.mxu0 }
 0x9b1   : > { %v1951_v50 = vpop.f32.mrf.mxu0 }
 0x9b2   : > { %v1170_v58 = vadd.f32 %v1951_v50, %v2495_v8 }
 0x9b3   : > { %v1161_v52 = vpop.f32.mrf.mxu0 }
 0x9b4   : > { %v1162_v53 = vadd.f32 %v1161_v52, %v2495_v8  ;;  %v1181_v1 = vsel %vm678_vm4, %v1170_v58, -inf }
 0x9b5   : > { %v1952_v54 = vpop.f32.mrf.mxu0 }
 0x9b6   : > { %v1175_v61 = vsel %vm678_vm4, %v1162_v53, -inf }
 0x9b7   : > { %v1164_v62 = vpop.f32.mrf.mxu0  ;;  %1176 = vmax.xlane.f32.xlu0 %v1175_v61 }
 0x9b8   : > { %v1165_v63 = vadd.f32 %v1164_v62, %v2495_v8 }
 0x9ba   : > { %v1178_v0 = vsel %vm678_vm4, %v1165_v63, -inf }
 0x9bb   : > { %1179 = vmax.xlane.f32.xlu1 %v1178_v0  ;;  %1182 = vmax.xlane.f32.xlu0 %v1181_v1 }
 0xa40   : > { %v1177_v2 = vpop.xlane.xlu0 %1176 }
 0xa41   : > { %v1184_v6 = vsub.f32 %v1162_v53, %v1177_v2 }
 0xa43   : > { %v1187_v7 = vmul.f32 1.442695, %v1184_v6 }
 0xa44   : > { %v1180_v9 = vpop.xlane.xlu1 %1179  ;;  %v1183_v10 = vpop.xlane.xlu0 %1182 }
 0xa45   : > { %2140 = vpow2.f32 %v1187_v7  ;;  %v1185_v11 = vsub.f32 %v1165_v63, %v1180_v9  ;;  %v1186_v12 = vsub.f32 %v1170_v58, %v1183_v10 }
 0xa47   : > { %v1189_v13 = vmul.f32 1.442695, %v1185_v11  ;;  %v1191_v14 = vmul.f32 1.442695, %v1186_v12 }
 0xa49   : > { %2142 = vpow2.f32 %v1189_v13 }
 0xa4a   : > { %2144 = vpow2.f32 %v1191_v14 }
 0xa52   : > { %v2141_v15 = vpop.eup %2140 }
 0xa53   : > { %v1193_v8 = vsel %vm678_vm4, %v2141_v15, 0.0 }
 0xa54   : > { %1194 = vadd.xlane.f32.xlu0 %v1193_v8  ;;  %v2092_v8 = vld [vmem:[%s2764_s5 + $0x8] sm:$0xff]  }
 0xa56   : > { %v2143_v16 = vpop.eup %2142 }
 0xa57   : > { %v2145_v17 = vpop.eup %2144  ;;  %v1196_v18 = vsel %vm678_vm4, %v2143_v16, 0.0 }
 0xa58   : > { %1197 = vadd.xlane.f32.xlu0 %v1196_v18  ;;  %v1199_v19 = vsel %vm678_vm4, %v2145_v17, 0.0 }
 0xa59   : > { %1200 = vadd.xlane.f32.xlu1 %v1199_v19 }
 0xa6a   : > { %1210 = vrot.lane.b32.xlu1 %v2484_v60, %s2279_s17 }
 0xa6e   : > { %1275 = vrot.lane.b32.xlu1 %v2555_v49, %s2280_s25  ;;  %1212 = vrot.lane.b32.xlu0 %v2481_v55, %s2279_s17 }
 0xa72   : > { %1277 = vrot.lane.b32.xlu1 %v2557_v51, %s2280_s25  ;;  %1279 = vrot.lane.b32.xlu0 %v2553_v48, %s2280_s25 }
 0xa76   : > { %1287 = vrot.lane.b32.xlu1 %v1093_v45, %s2281_s30  ;;  %1289 = vrot.lane.b32.xlu0 %v1096_v47, %s2281_s30 }
 0xa7a   : > { %1291 = vrot.lane.b32.xlu1 %v1943_v44, %s2281_s30 }
 0xadd   : > { %v1195_v20 = vpop.xlane.xlu0 %1194 }
 0xade   : > { %2146 = vrcp.f32 %v1195_v20 }
 0xae1   : > { %v1198_v21 = vpop.xlane.xlu0 %1197 }
 0xae2   : > { %v1201_v22 = vpop.xlane.xlu1 %1200  ;;  %2148 = vrcp.f32 %v1198_v21 }
 0xae3   : > { %2150 = vrcp.f32 %v1201_v22 }
 0xae5   : > { %v1213_v60 = vpop.permute.xlu0 %1212 }
 0xae6   : > { %v1222_v23 = vsel %vm725_vm5, %v1213_v60, 0  ;;  %2000 = vmatprep.subr.msk.bf16.mxu1 %vm725_vm5, %v1213_v60  ;;  %v1211_v55 = vpop.permute.xlu1 %1210 }
 0xae7   : > { %1954 = vmatpush3.bf16.msra.mxu1 %v1222_v23 }
 0xae8   : > { %1955 = vmatprep.subr.bf16.mxu1 %v1211_v55 }
 0xae9   : > { %v1280_v35 = vpop.permute.xlu0 %1279 }
 0xaea   : > { %v1276_v33 = vpop.permute.xlu1 %1275  ;;  %v1310_v47 = vsel %vm617_vm2, %v2522_v56, %v1280_v35  ;;  %v2094_v35 = vld [vmem:[%s2766_s7 + $0x18] sm:$0xff]  }
 0xaeb   : > { %1956 = vmatpush3.bf16.msra.mxu1 %v1211_v55  ;;  %v2147_v48 = vpop.eup %2146  ;;  %v1308_v39 = vsel %vm617_vm2, %v2524_v57, %v1276_v33  ;;  %1969 = vmatprep.subr.bf16.mxu0 %v2094_v35 }
 0xaec   : > { %v1205_v24 = vmul.f32 %v2147_v48, %v2141_v15  ;;  %1961 = vmatprep.subr.bf16.mxu1 %v2092_v8  ;;  %1970 = vmatpush3.bf16.msra.mxu0 %v2094_v35 }
 0xaed   : > { %v1290_v38 = vpop.permute.xlu0 %1289 }
 0xaee   : > { %v1278_v34 = vpop.permute.xlu1 %1277 }
 0xaef   : > { %v2149_v49 = vpop.eup %2148  ;;  %v1309_v44 = vsel %vm617_vm2, %v2526_v59, %v1278_v34 }
 0xaf0   : > { %v2151_v51 = vpop.eup %2150  ;;  %v1206_v25 = vmul.f32 %v2149_v49, %v2143_v16  ;;  %v1313_v50 = vsel %vm1311_vm6, %v1309_v44, %v1290_v38  ;;  %v2093_v16 = vld [vmem:[%s2764_s5] sm:$0xff]  }
 0xaf1   : > { %v1207_v26 = vmul.f32 %v2151_v51, %v2145_v17  ;;  %v1821_v38 = vld [vmem:[%s2765_s6] ss:$0 sm:$0xff] }
 0xaf2   : > { %v1208_v27 = vpack.c.bf16 %v1206_v25, %v1205_v24  ;;  %v1288_v36 = vpop.permute.xlu1 %1287 }
 0xaf3   : > { %v1209_v28 = vpack.c.bf16 %v1207_v26, %v1207_v26  ;;  %v1312_v40 = vsel %vm1311_vm6, %v1308_v39, %v1288_v36  ;;  %v2095_v36 = vld [vmem:[%s2766_s7 + $0x10] sm:$0xff]  }
 0xaf4   : > { %1957 = vmatprep.mubr.msk.bf16.mxu1 %vm678_vm4, %v1208_v27  ;;  %1971 = vmatprep.subr.bf16.mxu0 %v2095_v36 }
 0xaf5   : > { %1958 = vmatmul.mubr.msk.bf16.vlgmr.msra.gmra.mxu1 %vm678_vm4, %v1209_v28  ;;  %1972 = vmatpush3.bf16.msra.mxu0 %v2095_v36 }
 0xaf6   : > { %v1292_v41 = vpop.permute.xlu1 %1291  ;;  %1962 = vmatpush3.bf16.msra.mxu1 %v2092_v8 }
 0xaf7   : > { %v1314_v52 = vsel %vm1311_vm6, %v1310_v47, %v1292_v41  ;;  %1963 = vmatprep.subr.bf16.mxu1 %v2093_v16 }
 0xafa   : > { %1964 = vmatpush3.bf16.msra.mxu1 %v2093_v16 }
 0xbb5   : > { %v1959_v29 = vpop.f32.mrf.mxu1 }
 0xbb7   : > { %v1258_v30 = vpop.f32.mrf.mxu1 }
 0xbb8   : > { %1299 = vrot.lane.b32.xlu0 %v1258_v30, %s2282_s15 }
 0xbb9   : > { %v1960_v31 = vpop.f32.mrf.mxu1 }
 0xbbb   : > { %v1261_v32 = vpop.f32.mrf.mxu1 }
 0xbbc   : > { %1303 = vrot.lane.b32.xlu0 %v1959_v29, %s2282_s15  ;;  %1301 = vrot.lane.b32.xlu1 %v1261_v32, %s2282_s15 }
 0xc2a   : > { %v1300_v42 = vpop.permute.xlu0 %1299 }
 0xc2b   : > { %v1315_v45 = vsel %vm678_vm4, %v1312_v40, %v1300_v42 }
 0xc2c   : > { %v2608_v46 = vadd.f32 %v1315_v45, %v2436_v3 }
 0xc2e   : > { %v1302_v53 = vpop.permute.xlu1 %1301  ;;  %v1304_v54 = vpop.permute.xlu0 %1303  ;;  %v1321_v57 = vsel %vm467_vm1, %v2608_v46, 0.0 }
 0xc2f   : > { %v1316_v58 = vsel %vm678_vm4, %v1313_v50, %v1302_v53  ;;  %v1317_v61 = vsel %vm678_vm4, %v1314_v52, %v1304_v54  ;;  %1322 = vadd.xlane.f32.xlu1 %v1321_v57 }
 0xc30   : > { %v2617_v59 = vadd.f32 %v1316_v58, %v2440_v5  ;;  %v2620_v3 = vadd.f32 %v1317_v61, %v2438_v4 }
 0xc32   : > { %v1324_v56 = vsel %vm467_vm1, %v2617_v59, 0.0  ;;  %v1327_v62 = vsel %vm467_vm1, %v2620_v3, 0.0 }
 0xc33   : > { %1325 = vadd.xlane.f32.xlu0 %v1324_v56 }
 0xc37   : > { %1328 = vadd.xlane.f32.xlu0 %v1327_v62 }
 0xcb8   : > { %v1323_v63 = vpop.xlane.xlu1 %1322 }
 0xcb9   : > { %v1330_v0 = vmul.f32 0.03125, %v1323_v63 }
 0xcbb   : > { %v1333_v1 = vsub.f32 %v2608_v46, %v1330_v0 }
 0xcbc   : > { %v1326_v2 = vpop.xlane.xlu0 %1325 }
 0xcbd   : > { %v1331_v6 = vmul.f32 0.03125, %v1326_v2  ;;  %v1336_v7 = vmul.f32 %v1333_v1, %v1333_v1 }
 0xcbf   : > { %v1334_v5 = vsub.f32 %v2617_v59, %v1331_v6  ;;  %v1339_v4 = vsel %vm467_vm1, %v1336_v7, 0.0 }
 0xcc0   : > { %1340 = vadd.xlane.f32.xlu0 %v1339_v4  ;;  %v1329_v9 = vpop.xlane.xlu0 %1328 }
 0xcc1   : > { %v1332_v10 = vmul.f32 0.03125, %v1329_v9  ;;  %v1337_v11 = vmul.f32 %v1334_v5, %v1334_v5 }
 0xcc3   : > { %v1335_v12 = vsub.f32 %v2620_v3, %v1332_v10  ;;  %v1342_v13 = vsel %vm467_vm1, %v1337_v11, 0.0 }
 0xcc4   : > { %1343 = vadd.xlane.f32.xlu1 %v1342_v13 }
 0xcc5   : > { %v1338_v14 = vmul.f32 %v1335_v12, %v1335_v12 }
 0xcc7   : > { %v1345_v15 = vsel %vm467_vm1, %v1338_v14, 0.0 }
 0xcc8   : > { %1346 = vadd.xlane.f32.xlu0 %v1345_v15 }
 0xd49   : > { %v1341_v17 = vpop.xlane.xlu0 %1340 }
 0xd4a   : > { %v1348_v18 = vmul.f32 0.03125, %v1341_v17 }
 0xd4c   : > { %v1351_v19 = vadd.f32 1e-05, %v1348_v18 }
 0xd4d   : > { %v1344_v20 = vpop.xlane.xlu1 %1343 }
 0xd4e   : > { %2152 = vrsqrt.f32 %v1351_v19  ;;  %v1349_v21 = vmul.f32 0.03125, %v1344_v20 }
 0xd50   : > { %v1352_v22 = vadd.f32 1e-05, %v1349_v21 }
 0xd51   : > { %v1347_v60 = vpop.xlane.xlu0 %1346 }
 0xd52   : > { %2154 = vrsqrt.f32 %v1352_v22  ;;  %v1350_v23 = vmul.f32 0.03125, %v1347_v60 }
 0xd54   : > { %v1353_v55 = vadd.f32 1e-05, %v1350_v23 }
 0xd56   : > { %2156 = vrsqrt.f32 %v1353_v55 }
 0xd5b   : > { %v2153_v48 = vpop.eup %2152 }
 0xd5c   : > { %v1357_v49 = vmul.f32 %v2153_v48, %v1333_v1 }
 0xd5e   : > { %v1360_v25 = vmul.f32 %v2463_v37, %v1357_v49 }
 0xd5f   : > { %v2155_v51 = vpop.eup %2154 }
 0xd60   : > { %v1358_v24 = vmul.f32 %v2155_v51, %v1334_v5  ;;  %v1363_v29 = vadd.f32 %v2469_v43, %v1360_v25 }
 0xd62   : > { %v1361_v26 = vmul.f32 %v2463_v37, %v1358_v24 }
 0xd63   : > { %v2157_v27 = vpop.eup %2156 }
 0xd64   : > { %v1359_v28 = vmul.f32 %v2157_v27, %v1335_v12  ;;  %v1364_v30 = vadd.f32 %v2469_v43, %v1361_v26 }
 0xd66   : > { %v1366_v31 = vpack.c.bf16 %v1364_v30, %v1363_v29  ;;  %v1362_v32 = vmul.f32 %v2463_v37, %v1359_v28  ;;  %v2096_v37 = vld [vmem:[%s2766_s7 + $0x8] sm:$0xff]  }
 0xd67   : > { %1973 = vmatprep.subr.bf16.mxu0 %v2096_v37 }
 0xd68   : > { %1965 = vmatprep.mubr.msk.bf16.mxu1 %vm467_vm1, %v1366_v31  ;;  %v1365_v33 = vadd.f32 %v2469_v43, %v1362_v32  ;;  %1974 = vmatpush3.bf16.msra.mxu0 %v2096_v37  ;;  %v2097_v43 = vld [vmem:[%s2766_s7] sm:$0xff]  }
 0xd69   : > { %1975 = vmatprep.subr.bf16.mxu0 %v2097_v43 }
 0xd6a   : > { %v1367_v34 = vpack.c.bf16 %v1365_v33, %v1365_v33 }
 0xd6c   : > { %1966 = vmatmul.mubr.msk.bf16.vlgmr.msra.gmra.mxu1 %vm467_vm1, %v1367_v34  ;;  %1976 = vmatpush3.bf16.msra.mxu0 %v2097_v43 }
 0xe2c   : > { %v1967_v39 = vpop.f32.mrf.mxu1 }
 0xe2d   : > { %v2661_v40 = vadd.f32 %v1967_v39, %v1821_v38 }
 0xe2e   : > { %v1431_v41 = vpop.f32.mrf.mxu1 }
 0xe2f   : > { %v2664_v42 = vmul.f32 0.70710677, %v2661_v40  ;;  %v2666_v44 = vadd.f32 %v1821_v38, %v1431_v41 }
 0xe30   : > { %v1968_v45 = vpop.f32.mrf.mxu1 }
 0xe31   : > { %v1453_v47 = vand.u32 2147483647, %v2664_v42  ;;  %v2670_v50 = vmul.f32 0.70710677, %v2666_v44  ;;  %vm1513_vm7 = vcmp.lt.f32.partialorder %v2664_v42, 0.0 }
 0xe32   : > { %v1434_v52 = vpop.f32.mrf.mxu1 }
 0xe33   : > { %v1456_v53 = vmul.f32 0.3275911, %v1453_v47  ;;  %v1451_v54 = vand.u32 2147483647, %v2670_v50  ;;  %v2673_v57 = vadd.f32 %v1821_v38, %v1434_v52  ;;  %v1495_v2 = vsub.f32 0.0, %v1453_v47 }
 0xe34   : > { %vm1511_vm8 = vcmp.lt.f32.partialorder %v2670_v50, 0.0 }
 0xe35   : > { %v1459_v58 = vadd.f32 1.0, %v1456_v53  ;;  %v1454_v61 = vmul.f32 0.3275911, %v1451_v54  ;;  %v2676_v56 = vmul.f32 0.70710677, %v2673_v57  ;;  %v1493_v6 = vsub.f32 0.0, %v1451_v54 }
 0xe36   : > { %v1498_v7 = vmul.f32 %v1495_v2, %v1453_v47  ;;  %v1447_v2 = vmul.f32 0.5, %v2661_v40 }
 0xe37   : > { %2158 = vrcp.f32 %v1459_v58  ;;  %v1457_v62 = vadd.f32 1.0, %v1454_v61  ;;  %v1452_v63 = vand.u32 2147483647, %v2676_v56  ;;  %v1496_v4 = vmul.f32 %v1493_v6, %v1451_v54 }
 0xe38   : > { %v1503_v11 = vmul.f32 1.442695, %v1498_v7  ;;  %vm1512_vm9 = vcmp.lt.f32.partialorder %v2676_v56, 0.0  ;;  %v1445_v7 = vmul.f32 0.5, %v2666_v44  ;;  %v1826_v56 = vld [vmem:[%s2767_s8] ss:$0 sm:$0xff] }
 0xe39   : > { %2160 = vrcp.f32 %v1457_v62  ;;  %v1455_v0 = vmul.f32 0.3275911, %v1452_v63  ;;  %v1494_v9 = vsub.f32 0.0, %v1452_v63  ;;  %v1499_v15 = vmul.f32 1.442695, %v1496_v4 }
 0xe3b   : > { %v1458_v1 = vadd.f32 1.0, %v1455_v0  ;;  %v1497_v8 = vmul.f32 %v1494_v9, %v1452_v63 }
 0xe3d   : > { %2162 = vrcp.f32 %v1458_v1  ;;  %v1501_v22 = vmul.f32 1.442695, %v1497_v8 }
 0xe3e   : > { %2164 = vpow2.f32 %v1503_v11 }
 0xe3f   : > { %2166 = vpow2.f32 %v1499_v15 }
 0xe40   : > { %2168 = vpow2.f32 %v1501_v22 }
 0xe44   : > { %v2159_v5 = vpop.eup %2158 }
 0xe45   : > { %v1468_v10 = vmul.f32 1.0614054, %v2159_v5 }
 0xe46   : > { %v2161_v12 = vpop.eup %2160 }
 0xe47   : > { %v1471_v13 = vadd.f32 -1.4531521, %v1468_v10  ;;  %v1466_v14 = vmul.f32 1.0614054, %v2161_v12 }
 0xe49   : > { %v1474_v16 = vmul.f32 %v2159_v5, %v1471_v13  ;;  %v1469_v17 = vadd.f32 -1.4531521, %v1466_v14 }
 0xe4a   : > { %v2163_v18 = vpop.eup %2162 }
 0xe4b   : > { %v1477_v19 = vadd.f32 1.4214138, %v1474_v16  ;;  %v1472_v20 = vmul.f32 %v2161_v12, %v1469_v17  ;;  %v1467_v21 = vmul.f32 1.0614054, %v2163_v18  ;;  %v2165_v31 = vpop.eup %2164 }
 0xe4c   : > { %v2167_v37 = vpop.eup %2166 }
 0xe4d   : > { %v1480_v60 = vmul.f32 %v2159_v5, %v1477_v19  ;;  %v1475_v23 = vadd.f32 1.4214138, %v1472_v20  ;;  %v1470_v55 = vadd.f32 -1.4531521, %v1467_v21  ;;  %v2169_v52 = vpop.eup %2168 }
 0xe4f   : > { %v1483_v48 = vadd.f32 -0.28449672, %v1480_v60  ;;  %v1478_v49 = vmul.f32 %v2161_v12, %v1475_v23  ;;  %v1473_v51 = vmul.f32 %v2163_v18, %v1470_v55 }
 0xe51   : > { %v1486_v24 = vmul.f32 %v2159_v5, %v1483_v48  ;;  %v1481_v25 = vadd.f32 -0.28449672, %v1478_v49  ;;  %v1476_v26 = vadd.f32 1.4214138, %v1473_v51 }
 0xe53   : > { %v1489_v27 = vadd.f32 0.2548296, %v1486_v24  ;;  %v1484_v28 = vmul.f32 %v2161_v12, %v1481_v25  ;;  %v1479_v29 = vmul.f32 %v2163_v18, %v1476_v26 }
 0xe55   : > { %v1492_v30 = vmul.f32 %v2159_v5, %v1489_v27  ;;  %v1487_v32 = vadd.f32 0.2548296, %v1484_v28  ;;  %v1482_v33 = vadd.f32 -0.28449672, %v1479_v29  ;;  %v1446_v5 = vmul.f32 0.5, %v2673_v57 }
 0xe57   : > { %v1507_v34 = vmul.f32 %v2165_v31, %v1492_v30  ;;  %v1490_v35 = vmul.f32 %v2161_v12, %v1487_v32  ;;  %v1485_v36 = vmul.f32 %v2163_v18, %v1482_v33 }
 0xe59   : > { %v1510_v43 = vsub.f32 1.0, %v1507_v34  ;;  %v1505_v38 = vmul.f32 %v2167_v37, %v1490_v35  ;;  %v1488_v39 = vadd.f32 0.2548296, %v1485_v36 }
 0xe5b   : > { %v1516_v41 = vsub.f32 0.0, %v1510_v43  ;;  %v1508_v45 = vsub.f32 1.0, %v1505_v38  ;;  %v1491_v47 = vmul.f32 %v2163_v18, %v1488_v39 }
 0xe5d   : > { %v1514_v53 = vsub.f32 0.0, %v1508_v45  ;;  %v1506_v54 = vmul.f32 %v2169_v52, %v1491_v47  ;;  %v1519_v58 = vsel %vm1513_vm7, %v1516_v41, %v1510_v43 }
 0xe5e   : > { %v1522_v63 = vadd.f32 1.0, %v1519_v58 }
 0xe5f   : > { %v1517_v61 = vsel %vm1511_vm8, %v1514_v53, %v1508_v45  ;;  %v1509_v62 = vsub.f32 1.0, %v1506_v54 }
 0xe60   : > { %v1520_v1 = vadd.f32 1.0, %v1517_v61  ;;  %v1525_v4 = vmul.f32 %v1522_v63, %v1447_v2 }
 0xe61   : > { %v1515_v0 = vsub.f32 0.0, %v1509_v62 }
 0xe62   : > { %v1523_v9 = vmul.f32 %v1520_v1, %v1445_v7  ;;  %v1527_v11 = vpack.c.bf16 %v1525_v4, %v1525_v4 }
 0xe63   : > { %v1518_v6 = vsel %vm1512_vm9, %v1515_v0, %v1509_v62 }
 0xe64   : > { %v1521_v42 = vadd.f32 1.0, %v1518_v6 }
 0xe66   : > { %v1524_v10 = vmul.f32 %v1521_v42, %v1446_v5 }
 0xe68   : > { %v1526_v50 = vpack.c.bf16 %v1524_v10, %v1523_v9 }
 0xe6a   : > { %1977 = vmatprep.mubr.msk.bf16.mxu0 %vm1567_vm10, %v1526_v50 }
 0xe6b   : > { %1978 = vmatmul.mubr.msk.bf16.vlgmr.msra.gmra.mxu0 %vm1567_vm10, %v1527_v11 }
 0xf2b   : > { %v1979_v12 = vpop.f32.mrf.mxu0 }
 0xf2c   : > { %v1617_v40 = vadd.f32 %v1979_v12, %v1826_v56 }
 0xf2d   : > { %v1608_v13 = vpop.f32.mrf.mxu0 }
 0xf2e   : > { %v1624_v44 = vadd.f32 %v1617_v40, %v2620_v3  ;;  %v1609_v14 = vadd.f32 %v1826_v56, %v1608_v13 }
 0xf2f   : > { %v1980_v57 = vpop.f32.mrf.mxu0 }
 0xf30   : > { %1627 = vst.msk [vmem:[#allocation2 + $0x10] sm:$0xff] %vm467_vm1, %v1624_v44  ;;  %v1622_v15 = vadd.f32 %v1609_v14, %v2608_v46 }
 0xf31   : > { %v1611_v8 = vpop.f32.mrf.mxu0 }
 0xf32   : > { %1625 = vst.msk [vmem:[#allocation2] sm:$0xff] %vm467_vm1, %v1622_v15  ;;  %v1612_v16 = vadd.f32 %v1826_v56, %v1611_v8  ;;  %1631 = sbr.rel (%p1833_p0) target bundleno = 4405 (0x1135), region = 80 }
 0xf34   : > { %v1623_v17 = vadd.f32 %v1612_v16, %v2617_v59 }
 0xf36   : > { %1626 = vst.msk [vmem:[#allocation2 + $0x8] sm:$0xff] %vm467_vm1, %v1623_v17 }
 0xf37   : > { %vm1634_vm11 = vcmask 253952   ;;  %v2170_v46 = vld [vmem:[%s2770_s11 + $0x8] sm:$0xff]   ;;  %v2283_v60 = vmov 0.0   ;;  %vm2284_vm12 = vmmov 0   ;;  %v2171_v59 = vld [vmem:[%s2770_s11] sm:$0xff]  }
 0xf38   : > { %v1635_v18 = vsel %vm1634_vm11, %v1622_v15, 0.0  ;;  %1981 = vmatprep.subr.bf16.mxu0 %v2283_v60  ;;  %1985 = vmatprep.mubr.msk.bf16.mxu0 %vm2284_vm12, %v2283_v60  ;;  %v1632_v51 = vld [vmem:[%s2768_s9] sm:$0x1] }
 0xf39   : > { %1636 = vadd.xlane.f32.xlu0 %v1635_v18  ;;  %1982 = vmatpush3.bf16.msra.mxu0 %v2170_v46  ;;  %v1633_v25 = vld [vmem:[%s2769_s10] sm:$0x1] }
 0xf3a   : > { %1983 = vmatprep.subr.bf16.mxu0 %v2283_v60  ;;  %v1655_v29 = vld [vmem:[%s2771_s12] sm:$0x1] }
 0xf3d   : > { %1984 = vmatpush3.bf16.msra.mxu0 %v2171_v59 }
 0xfc2   : > { %v1637_v3 = vpop.xlane.xlu0 %1636 }
 0xfc3   : > { %v1638_v19 = vmul.f32 0.03125, %v1637_v3 }
 0xfc5   : > { %v1639_v20 = vsub.f32 %v1622_v15, %v1638_v19 }
 0xfc7   : > { %v1640_v21 = vmul.f32 %v1639_v20, %v1639_v20 }
 0xfc9   : > { %v1641_v22 = vsel %vm1634_vm11, %v1640_v21, 0.0 }
 0xfca   : > { %1642 = vadd.xlane.f32.xlu0 %v1641_v22 }
0x1053   : > { %v1643_v23 = vpop.xlane.xlu0 %1642 }
0x1054   : > { %v1644_v55 = vmul.f32 0.03125, %v1643_v23 }
0x1056   : > { %v1645_v48 = vadd.f32 1e-05, %v1644_v55 }
0x1058   : > { %2172 = vrsqrt.f32 %v1645_v48 }
0x1065   : > { %v2173_v49 = vpop.eup %2172 }
0x1066   : > { %v1647_v24 = vmul.f32 %v2173_v49, %v1639_v20 }
0x1068   : > { %v1648_v26 = vmul.f32 %v1647_v24, %v1632_v51 }
0x106a   : > { %v1649_v27 = vadd.f32 %v1648_v26, %v1633_v25 }
0x106c   : > { %v1650_v28 = vpack.c.bf16 %v1649_v27, %v1649_v27 }
0x106e   : > { %1986 = vmatmul.mubr.msk.bf16.vlgmr.msra.gmra.mxu0 %vm467_vm1, %v1650_v28 }
0x112e   : > { %v1705_v30 = vpop.f32.mrf.mxu0 }
0x112f   : > { %v1706_v31 = vadd.f32 %v1705_v30, %v1655_v29 }
0x1130   : > { %v1987_v32 = vpop.f32.mrf.mxu0 }
0x1131   : > { %1711 = vst [vmem:[%s2433_s21] sm:$0x1] %v1706_v31 }
0x1132   : > { %v1708_v33 = vpop.f32.mrf.mxu0 }
0x1134   : > { %v1988_v34 = vpop.f32.mrf.mxu0 }
0x1135 PF: > { %s1837_s22 = sshll.u32 %s2254_s29, 4  ;;  %s1725_s25 = sshll.u32 %s2433_s21, 4  ;;  %s1726_s25 = int_to_ptr.vmem [resolvable:$true] %s1725_s25 }
0x1136   : > { %s1723_s17 = scalar_lea.hbm %s2772_s13, %s1837_s22  ;;  %s2790_s30 = sand.u32 1, %s2242_s26  }
0x1137   : > { %s1713_s16 = scalar_lea.sflag [#allocation4], %s2790_s30  ;;  %s2174_s15 = scalar_lea.vmem %s1726_s25, 16 }
0x1138   : > { %p2175_p1 = scmp.ne.s32.totalorder %s1726_s25, %s2174_s15  ;;  %s2285_s18 = smov [#allocation3]  }
0x1139   : > { %s2178_s0 = sshll.u32 %s2285_s18, 4  ;;  %s2179_s0 = int_to_ptr.vmem [resolvable:$false] %s2178_s0 }
0x113a   : > { %p2176_p2 = pnand %p2175_p1, %p2405_p3  ;;  %s2180_s1 = scalar_lea.vmem %s2179_s0, 32 }
0x113b   : > { %p2181_p5 = scmp.lt.s32.totalorder %s1726_s25, %s2179_s0  ;;  %p2182_p6 = scmp.lt.s32.totalorder %s2180_s1, %s2174_s15 }
0x113c   : > { %p2177_p4 = pneg %p2176_p2 }
0x113d   : > { %p2183_p7 = por %p2182_p6, %p2181_p5 }
0x113f   : > { %p2184_p8 = pnand %p2183_p7, %p2177_p4 }
0x1141   : > { %2187 = shalt.err (!%p2184_p8)
}
0x1142   : > { %s2188_s29 = scalar_lea.hbm %s1723_s17, 16  ;;  %s2192_s28 = scalar_lea.hbm %s2772_s13, 32 }
0x1143   : > { %p2189_p10 = scmp.ne.s32.totalorder %s1723_s17, %s2188_s29  ;;  %p2193_p13 = scmp.lt.s32.totalorder %s1723_s17, %s2772_s13 }
0x1144   : > { %p2194_p0 = scmp.lt.s32.totalorder %s2192_s28, %s2188_s29 }
0x1145   : > { %p2190_p11 = pnand %p2189_p10, %p2405_p3 }
0x1146   : > { %p2195_p1 = por %p2194_p0, %p2193_p13 }
0x1147   : > { %p2191_p12 = pneg %p2190_p11 }
0x1149   : > { %p2196_p2 = pnand %p2195_p1, %p2191_p12 }
0x114b   : > { %2199 = shalt.err (!%p2196_p2)
}
0x114c   : > { %2002 = dma.vmem_to_hbm [thread:$0]  (%p2405_p3), %s1726_s25, 16, %s1723_s17, %s1713_s16  }
0x114d PF: > { %s2791_s0 = sld [smem:[#allocation8_spill]] }
0x114e   : > { %s2792_s1 = sld [smem:[#allocation6_spill]] }
0x1153   : > { %p2008_p4 = scmp.ge.s32.totalorder %s2791_s0, 2 }
0x1154   : > { %s1737_s18 = sand.u32 1, %s2792_s1  }
0x1155   : > { %p2005_p5 = pnand %p2008_p4, %p2415_p9  ;;  %s1738_s21 = scalar_lea.sflag [#allocation4], %s1737_s18 }
0x1157   : > { %p2006_p6 = pneg %p2005_p5 }
0x1159   : > { %2233 = dma.done.wait (%p2006_p6), %s1738_s21, 16  }
0x115a   : > { %2235 = vsyncadd (%p2006_p6), %s1738_s21, 4294967280  ;;  %s26_s15 = sadd.s32 1, %s2791_s0   ;;  %s2794_s28 = sld [smem:[#allocation7_spill]] }
0x115b   : > { %p23_p7 = scmp.ge.s32.totalorder %s26_s15, 6   ;;  %s2795_s30 = sld [smem:[#allocation9_spill]] }
0x115c   : > { %s2796_s25 = smov %s2242_s26  ;;  %s2797_s26 = smov %s2246_s27 }
0x115d   : > { %s2798_s27 = smov %s2423_s24  ;;  %s2799_s29 = smov %s2262_s14 }
0x115e   : > { %s2800_s14 = smov %s2806_s19  ;;  %25 = sbr.rel (!%p23_p7) target bundleno = 8 (0x8), region = 115 }
0x1163   :  { %1742 = vsyncpa [#allocation4], 1 }
0x1164   :  { %1744 = vsyncpa [#allocation4 + $0x1], 1 }

</bundles_post_ra>
